<compile_context>
chip_gen: v5e
topology: v5e:2x2
jax: 0.10.0
libtpu: 0.0.40
codegen_flags: <defaults>
</compile_context>

<pallas_src>
import functools
import math

import jax
import jax.numpy as jnp
from jax import lax
from jax.experimental import pallas as pl
from jax.experimental.pallas import tpu as pltpu


def _round_up(n, m):
    return ((n + m - 1) // m) * m


def _cdiv(a, b):
    return (a + b - 1) // b


# ---------------------------------------------------------------------------
# Kernel: one fused GRBFKANLayer on a (tb, I) row tile.
# ---------------------------------------------------------------------------
def _grbf_kan_layer_kernel(x_ref, w_ref, b_ref, ln_g_ref, ln_b_ref, o_ref, *,
                           grid_pts, eps):
    # x_ref   : (tb, I)             input rows
    # w_ref   : (I*(G+1), O) bf16   fused [W_base^T ; spline_weight grid-major]
    # b_ref   : (1, O)  f32         base-linear bias
    # ln_g/b  : (1, I)  f32         LayerNorm affine (gamma / beta)
    # o_ref   : (tb, O)
    x = x_ref[...].astype(jnp.float32)

    # --- base branch: SiLU(x)  (EUP sigmoid + VPU mul) ----------------------
    base_act = x * jax.nn.sigmoid(x)

    # --- spline branch: LayerNorm over the input features -------------------
    mean = jnp.mean(x, axis=-1, keepdims=True)
    cen = x - mean
    var = jnp.mean(cen * cen, axis=-1, keepdims=True)
    xn = cen * lax.rsqrt(var + eps)
    xn = xn * ln_g_ref[...] + ln_b_ref[...]

    # Gaussian RBF basis per (static) grid point, stacked along lanes in
    # grid-major order so that ONE K = I*(G+1) MXU matmul replaces (G+1)
    # K = I matmuls (each of which would waste >87% of the MXU K dimension).
    pieces = [base_act] + [jnp.exp(-jnp.square(xn - g)) for g in grid_pts]
    a = jnp.concatenate(pieces, axis=-1)                    # (tb, I*(G+1)) f32

    # bf16 operands, f32 accumulation — native MXU path on v5e/v6e/v7x.
    y = jnp.dot(a.astype(jnp.bfloat16), w_ref[...],
                preferred_element_type=jnp.float32)
    y = y + b_ref[...]
    o_ref[...] = y.astype(o_ref.dtype)


# ---------------------------------------------------------------------------
# One pallas_call per layer.
# ---------------------------------------------------------------------------
def _grbf_kan_layer(x2, fused, *, tb, grid_steps):
    B_pad, I = x2.shape
    K, O = fused["w_fused"].shape
    kernel = functools.partial(_grbf_kan_layer_kernel,
                               grid_pts=fused["grid"], eps=fused["eps"])
    return pl.pallas_call(
        kernel,
        out_shape=jax.ShapeDtypeStruct((B_pad, O), x2.dtype),
        grid_spec=pltpu.PrefetchScalarGridSpec(
            num_scalar_prefetch=0,
            grid=(grid_steps,),
            in_specs=[
                pl.BlockSpec((tb, I), lambda i: (i, 0)),
                # Grid-invariant operands (constant index_map -> fetched once).
                # TODO(synk): if I/O/G scale up, single-buffer these
                # (pipeline_mode=pl.Buffered(1)) or K-tile the fused weight so
                # the resident block stays within v7x's 64 MiB VMEM.
                pl.BlockSpec((K, O), lambda i: (0, 0)),
                pl.BlockSpec((1, O), lambda i: (0, 0)),
                pl.BlockSpec((1, I), lambda i: (0, 0)),
                pl.BlockSpec((1, I), lambda i: (0, 0)),
            ],
            # TODO(synk): for output_dims < 128, fold batch rows into the lane
            # axis to get lane-dense (unmasked) stores.
            out_specs=pl.BlockSpec((tb, O), lambda i: (i, 0)),
        ),
        compiler_params=pltpu.CompilerParams(
            dimension_semantics=("parallel",)),
    )(x2, fused["w_fused"], fused["bias"], fused["ln_gamma"], fused["ln_beta"])


# ---------------------------------------------------------------------------
# Full GRBF_KAN forward: flatten once, pad once, chain layers, reshape back.
# ---------------------------------------------------------------------------
def grbf_kan_forward(x, fused_layers, *, batch_tile=512):
    """x: (..., layers_hidden[0]); fused_layers: list from fuse_layer_params."""
    lead = x.shape[:-1]
    x2 = jnp.reshape(x, (-1, x.shape[-1]))
    B = x2.shape[0]

    # Large batch tile to amortize the ~0.35 us per-grid-step overhead, but
    # keep at least 2 grid steps so the "parallel" axis spans both v7x cores.
    n_tiles = max(1, _cdiv(B, batch_tile))
    if n_tiles == 1 and B > 8:
        n_tiles = 2
    tb = _round_up(_cdiv(B, n_tiles), 8)
    grid_steps = _cdiv(B, tb)
    B_pad = grid_steps * tb
    if B_pad != B:
        # Zero-padded rows are computed harmlessly and sliced off at the end.
        x2 = jnp.pad(x2, ((0, B_pad - B), (0, 0)))

    h = x2
    for fused in fused_layers:
        h = _grbf_kan_layer(h, fused, tb=tb, grid_steps=grid_steps)
    h = h[:B]
    return jnp.reshape(h, lead + (h.shape[-1],))


# ---------------------------------------------------------------------------
# Parameter init (mirrors GRBFKANLayer.__init__) and one-time fusion.
# ---------------------------------------------------------------------------
def init_grbf_kan_params(key, layers_hidden, *, grid_min=-2.0, grid_max=2.0,
                         num_grids=8, spline_weight_init_scale=0.1):
    params = []
    for din, dout in zip(layers_hidden[:-1], layers_hidden[1:]):
        key, kw, kb, ks = jax.random.split(key, 4)
        bound = 1.0 / math.sqrt(din)                     # nn.Linear default init
        w_base = jax.random.uniform(kw, (dout, din), jnp.float32, -bound, bound)
        b_base = jax.random.uniform(kb, (dout,), jnp.float32, -bound, bound)
        w_spline = spline_weight_init_scale * jax.random.truncated_normal(
            ks, -2.0, 2.0, (dout, din, num_grids), jnp.float32)
        grid = tuple(grid_min + i * (grid_max - grid_min) / (num_grids - 1)
                     for i in range(num_grids))          # torch.linspace
        params.append(dict(
            w_base=w_base, b_base=b_base, w_spline=w_spline,
            ln_gamma=jnp.ones((din,), jnp.float32),
            ln_beta=jnp.zeros((din,), jnp.float32),
            grid=grid, eps=1e-5))
    return params


def fuse_layer_params(p):
    """One-time parameter massaging (hoisted OUT of the per-call path)."""
    dout, din = p["w_base"].shape
    G = p["w_spline"].shape[-1]
    # Row n*din + i of the spline block holds spline_weight[o, i, n], matching
    # the grid-major column order built inside the kernel.
    w_spl = jnp.transpose(p["w_spline"], (2, 1, 0)).reshape(G * din, dout)
    w_fused = jnp.concatenate([jnp.transpose(p["w_base"]), w_spl], axis=0)
    return dict(
        w_fused=w_fused.astype(jnp.bfloat16),           # (din*(G+1), dout)
        bias=p["b_base"].reshape(1, dout).astype(jnp.float32),
        ln_gamma=p["ln_gamma"].reshape(1, din).astype(jnp.float32),
        ln_beta=p["ln_beta"].reshape(1, din).astype(jnp.float32),
        grid=tuple(float(g) for g in p["grid"]),
        eps=float(p["eps"]),
    )


# ---------------------------------------------------------------------------
# Pure-JAX reference mirroring the PyTorch forward (f32 throughout).
# ---------------------------------------------------------------------------
def _reference(x, params):
    h = x.astype(jnp.float32)
    for p in params:
        base = jax.nn.silu(h) @ jnp.transpose(p["w_base"]) + p["b_base"]
        mean = jnp.mean(h, axis=-1, keepdims=True)
        var = jnp.mean((h - mean) ** 2, axis=-1, keepdims=True)
        xn = (h - mean) * lax.rsqrt(var + p["eps"])
        xn = xn * p["ln_gamma"] + p["ln_beta"]
        basis = jnp.exp(-(xn[..., None] - jnp.asarray(p["grid"])) ** 2)
        spline = jnp.einsum('...ig,oig->...o', basis, p["w_spline"])
        h = base + spline
    return h


if __name__ == "__main__":
    # Small shapes consistent with the module: x (..., layers_hidden[0]).
    layers_hidden = [16, 32, 64]
    N, C, H = 2, 4, 16                      # x: (2, 4, 16, 16) -> 128 rows
    num_grids = 8

    key = jax.random.PRNGKey(0)
    kx, kp = jax.random.split(key)
    x = jax.random.normal(kx, (N, C, H, layers_hidden[0]), dtype=jnp.float32)

    params = init_grbf_kan_params(kp, layers_hidden, num_grids=num_grids)
    fused = [fuse_layer_params(p) for p in params]

    out = grbf_kan_forward(x, fused)
    out = jax.block_until_ready(out)

    ref = _reference(x, params)
    assert out.shape == (N, C, H, layers_hidden[-1]), out.shape
    err = float(jnp.max(jnp.abs(out - ref)))
    # bf16 MXU operands with f32 accumulation -> relaxed tolerance vs f32 ref.
    assert jnp.allclose(out, ref, atol=2e-2, rtol=2e-2), f"max abs err {err}"

    print("KERNEL_OK")
</pallas_src>

<mosaic_0001>
module attributes {stable_mosaic.version = 11 : i64} {
  func.func @_grbf_kan_layer_kernel(%arg0: i32, %arg1: memref<64x16xf32, #tpu.memory_space<vmem>>, %arg2: memref<144x32xbf16, #tpu.memory_space<vmem>>, %arg3: memref<1x32xf32, #tpu.memory_space<vmem>>, %arg4: memref<1x16xf32, #tpu.memory_space<vmem>>, %arg5: memref<1x16xf32, #tpu.memory_space<vmem>>, %arg6: memref<64x32xf32, #tpu.memory_space<vmem>>) attributes {dimension_semantics = [#tpu.dimension_semantics<parallel>], iteration_bounds = array<i64: 2>, scalar_prefetch = 0 : i64, scratch_operands = 0 : i64, tpu.core_type = #tpu.core_type<tc>, window_params = [{transform_indices = @transform_0, window_bounds = array<i64: 64, 16>}, {pipeline_mode = #tpu.pipeline_mode<synchronous>, transform_indices = @transform_1, window_bounds = array<i64: 144, 32>}, {pipeline_mode = #tpu.pipeline_mode<synchronous>, transform_indices = @transform_2, window_bounds = array<i64: 1, 32>}, {pipeline_mode = #tpu.pipeline_mode<synchronous>, transform_indices = @transform_3, window_bounds = array<i64: 1, 16>}, {pipeline_mode = #tpu.pipeline_mode<synchronous>, transform_indices = @transform_4, window_bounds = array<i64: 1, 16>}, {transform_indices = @transform_5, window_bounds = array<i64: 64, 32>}]} {
    %c0 = arith.constant 0 : index
    %c0_0 = arith.constant 0 : index
    %0 = vector.load %arg1[%c0, %c0_0] : memref<64x16xf32, #tpu.memory_space<vmem>>, vector<64x16xf32>
    %1 = arith.negf %0 : vector<64x16xf32>
    %2 = math.exp %1 : vector<64x16xf32>
    %cst = arith.constant 1.000000e+00 : f32
    %3 = vector.broadcast %cst : f32 to vector<64x16xf32>
    %4 = arith.addf %3, %2 : vector<64x16xf32>
    %5 = arith.divf %3, %4 : vector<64x16xf32>
    %6 = arith.mulf %0, %5 : vector<64x16xf32>
    %cst_1 = arith.constant dense<0.000000e+00> : vector<64xf32>
    %7 = vector.multi_reduction <add>, %0, %cst_1 [1] : vector<64x16xf32> to vector<64xf32>
    %8 = vector.shape_cast %7 : vector<64xf32> to vector<64x1xf32>
    %cst_2 = arith.constant 1.600000e+01 : f32
    %9 = vector.broadcast %cst_2 : f32 to vector<64x1xf32>
    %10 = arith.divf %8, %9 : vector<64x1xf32>
    %11 = vector.broadcast %10 : vector<64x1xf32> to vector<64x16xf32>
    %12 = arith.subf %0, %11 : vector<64x16xf32>
    %13 = arith.mulf %12, %12 : vector<64x16xf32>
    %cst_3 = arith.constant dense<0.000000e+00> : vector<64xf32>
    %14 = vector.multi_reduction <add>, %13, %cst_3 [1] : vector<64x16xf32> to vector<64xf32>
    %15 = vector.shape_cast %14 : vector<64xf32> to vector<64x1xf32>
    %cst_4 = arith.constant 1.600000e+01 : f32
    %16 = vector.broadcast %cst_4 : f32 to vector<64x1xf32>
    %17 = arith.divf %15, %16 : vector<64x1xf32>
    %cst_5 = arith.constant 9.99999974E-6 : f32
    %18 = vector.broadcast %cst_5 : f32 to vector<64x1xf32>
    %19 = arith.addf %17, %18 : vector<64x1xf32>
    %20 = math.rsqrt %19 : vector<64x1xf32>
    %21 = vector.broadcast %20 : vector<64x1xf32> to vector<64x16xf32>
    %22 = arith.mulf %12, %21 : vector<64x16xf32>
    %c0_6 = arith.constant 0 : index
    %c0_7 = arith.constant 0 : index
    %23 = vector.load %arg4[%c0_6, %c0_7] : memref<1x16xf32, #tpu.memory_space<vmem>>, vector<1x16xf32>
    %24 = vector.broadcast %23 : vector<1x16xf32> to vector<64x16xf32>
    %25 = arith.mulf %22, %24 : vector<64x16xf32>
    %c0_8 = arith.constant 0 : index
    %c0_9 = arith.constant 0 : index
    %26 = vector.load %arg5[%c0_8, %c0_9] : memref<1x16xf32, #tpu.memory_space<vmem>>, vector<1x16xf32>
    %27 = vector.broadcast %26 : vector<1x16xf32> to vector<64x16xf32>
    %28 = arith.addf %25, %27 : vector<64x16xf32>
    %cst_10 = arith.constant -2.000000e+00 : f32
    %29 = vector.broadcast %cst_10 : f32 to vector<64x16xf32>
    %30 = arith.subf %28, %29 : vector<64x16xf32>
    %31 = arith.mulf %30, %30 : vector<64x16xf32>
    %cst_11 = arith.constant 0.000000e+00 : f32
    %32 = vector.broadcast %cst_11 : f32 to vector<64x16xf32>
    %33 = arith.subf %32, %31 : vector<64x16xf32>
    %34 = math.exp %33 : vector<64x16xf32>
    %cst_12 = arith.constant -1.42857146 : f32
    %35 = vector.broadcast %cst_12 : f32 to vector<64x16xf32>
    %36 = arith.subf %28, %35 : vector<64x16xf32>
    %37 = arith.mulf %36, %36 : vector<64x16xf32>
    %cst_13 = arith.constant 0.000000e+00 : f32
    %38 = vector.broadcast %cst_13 : f32 to vector<64x16xf32>
    %39 = arith.subf %38, %37 : vector<64x16xf32>
    %40 = math.exp %39 : vector<64x16xf32>
    %cst_14 = arith.constant -0.857142865 : f32
    %41 = vector.broadcast %cst_14 : f32 to vector<64x16xf32>
    %42 = arith.subf %28, %41 : vector<64x16xf32>
    %43 = arith.mulf %42, %42 : vector<64x16xf32>
    %cst_15 = arith.constant 0.000000e+00 : f32
    %44 = vector.broadcast %cst_15 : f32 to vector<64x16xf32>
    %45 = arith.subf %44, %43 : vector<64x16xf32>
    %46 = math.exp %45 : vector<64x16xf32>
    %cst_16 = arith.constant -0.285714298 : f32
    %47 = vector.broadcast %cst_16 : f32 to vector<64x16xf32>
    %48 = arith.subf %28, %47 : vector<64x16xf32>
    %49 = arith.mulf %48, %48 : vector<64x16xf32>
    %cst_17 = arith.constant 0.000000e+00 : f32
    %50 = vector.broadcast %cst_17 : f32 to vector<64x16xf32>
    %51 = arith.subf %50, %49 : vector<64x16xf32>
    %52 = math.exp %51 : vector<64x16xf32>
    %cst_18 = arith.constant 0.285714298 : f32
    %53 = vector.broadcast %cst_18 : f32 to vector<64x16xf32>
    %54 = arith.subf %28, %53 : vector<64x16xf32>
    %55 = arith.mulf %54, %54 : vector<64x16xf32>
    %cst_19 = arith.constant 0.000000e+00 : f32
    %56 = vector.broadcast %cst_19 : f32 to vector<64x16xf32>
    %57 = arith.subf %56, %55 : vector<64x16xf32>
    %58 = math.exp %57 : vector<64x16xf32>
    %cst_20 = arith.constant 0.857142865 : f32
    %59 = vector.broadcast %cst_20 : f32 to vector<64x16xf32>
    %60 = arith.subf %28, %59 : vector<64x16xf32>
    %61 = arith.mulf %60, %60 : vector<64x16xf32>
    %cst_21 = arith.constant 0.000000e+00 : f32
    %62 = vector.broadcast %cst_21 : f32 to vector<64x16xf32>
    %63 = arith.subf %62, %61 : vector<64x16xf32>
    %64 = math.exp %63 : vector<64x16xf32>
    %cst_22 = arith.constant 1.42857146 : f32
    %65 = vector.broadcast %cst_22 : f32 to vector<64x16xf32>
    %66 = arith.subf %28, %65 : vector<64x16xf32>
    %67 = arith.mulf %66, %66 : vector<64x16xf32>
    %cst_23 = arith.constant 0.000000e+00 : f32
    %68 = vector.broadcast %cst_23 : f32 to vector<64x16xf32>
    %69 = arith.subf %68, %67 : vector<64x16xf32>
    %70 = math.exp %69 : vector<64x16xf32>
    %cst_24 = arith.constant 2.000000e+00 : f32
    %71 = vector.broadcast %cst_24 : f32 to vector<64x16xf32>
    %72 = arith.subf %28, %71 : vector<64x16xf32>
    %73 = arith.mulf %72, %72 : vector<64x16xf32>
    %cst_25 = arith.constant 0.000000e+00 : f32
    %74 = vector.broadcast %cst_25 : f32 to vector<64x16xf32>
    %75 = arith.subf %74, %73 : vector<64x16xf32>
    %76 = math.exp %75 : vector<64x16xf32>
    %77 = tpu.concatenate %6, %34, %40, %46, %52, %58, %64, %70, %76 in 1 : vector<64x16xf32>, vector<64x16xf32>, vector<64x16xf32>, vector<64x16xf32>, vector<64x16xf32>, vector<64x16xf32>, vector<64x16xf32>, vector<64x16xf32>, vector<64x16xf32> -> vector<64x144xf32>
    %78 = arith.truncf %77 : vector<64x144xf32> to vector<64x144xbf16>
    %c0_26 = arith.constant 0 : index
    %c0_27 = arith.constant 0 : index
    %79 = vector.load %arg2[%c0_26, %c0_27] : memref<144x32xbf16, #tpu.memory_space<vmem>>, vector<144x32xbf16>
    %cst_28 = arith.constant dense<0.000000e+00> : vector<64x32xf32>
    %80 = tpu.matmul %78, %79, %cst_28 {dimension_numbers = #tpu.dot_dimension_numbers<[1], [0], [0], [1], [0, 0, 1, 1], [], []>} : vector<64x144xbf16>, vector<144x32xbf16>, vector<64x32xf32> -> vector<64x32xf32>
    %c0_29 = arith.constant 0 : index
    %c0_30 = arith.constant 0 : index
    %81 = vector.load %arg3[%c0_29, %c0_30] : memref<1x32xf32, #tpu.memory_space<vmem>>, vector<1x32xf32>
    %82 = vector.broadcast %81 : vector<1x32xf32> to vector<64x32xf32>
    %83 = arith.addf %80, %82 : vector<64x32xf32>
    %c0_31 = arith.constant 0 : index
    %c0_32 = arith.constant 0 : index
    %84 = vector.load %arg6[%c0_31, %c0_32] : memref<64x32xf32, #tpu.memory_space<vmem>>, vector<64x32xf32>
    tpu.vector_store %arg6[%c0_31, %c0_32], %83 {strides = array<i32>} : memref<64x32xf32, #tpu.memory_space<vmem>>, vector<64x32xf32>,
    return
  }
  func.func @transform_0(%arg0: i32) -> (i32, i32) {
    %c0_i32 = arith.constant 0 : i32
    %c0_i32_0 = arith.constant 0 : i32
    return %arg0, %c0_i32 : i32, i32
  }
  func.func @transform_1(%arg0: i32) -> (i32, i32) {
    %c0_i32 = arith.constant 0 : i32
    %c0_i32_0 = arith.constant 0 : i32
    %c0_i32_1 = arith.constant 0 : i32
    return %c0_i32, %c0_i32_0 : i32, i32
  }
  func.func @transform_2(%arg0: i32) -> (i32, i32) {
    %c0_i32 = arith.constant 0 : i32
    %c0_i32_0 = arith.constant 0 : i32
    %c0_i32_1 = arith.constant 0 : i32
    return %c0_i32, %c0_i32_0 : i32, i32
  }
  func.func @transform_3(%arg0: i32) -> (i32, i32) {
    %c0_i32 = arith.constant 0 : i32
    %c0_i32_0 = arith.constant 0 : i32
    %c0_i32_1 = arith.constant 0 : i32
    return %c0_i32, %c0_i32_0 : i32, i32
  }
  func.func @transform_4(%arg0: i32) -> (i32, i32) {
    %c0_i32 = arith.constant 0 : i32
    %c0_i32_0 = arith.constant 0 : i32
    %c0_i32_1 = arith.constant 0 : i32
    return %c0_i32, %c0_i32_0 : i32, i32
  }
  func.func @transform_5(%arg0: i32) -> (i32, i32) {
    %c0_i32 = arith.constant 0 : i32
    %c0_i32_0 = arith.constant 0 : i32
    return %arg0, %c0_i32 : i32, i32
  }
}

</mosaic_0001>

<bundles_post_ra>
// kernel: tpu_custom_call.1
= control target key start
LH: loop header
LB: loop body
LE: loop exit
PB: predicated region body
PF: predicated region fallthrough
CT: control target
= control target key end

     0   :  { %s1961_s18 = smov 0   ;;  %s2674_s0 = inlined_call_operand.vmem [shape: f32[128,16], index: 0, kind: input, shape index: {}]   ;;  %s2675_s1 = inlined_call_operand.vmem [shape: bf16[144,32], index: 1, kind: input, shape index: {}]   ;;  %s2676_s2 = inlined_call_operand.vmem [shape: f32[1,32], index: 2, kind: input, shape index: {}]   ;;  %s2677_s3 = inlined_call_operand.vmem [shape: f32[1,16], index: 3, kind: input, shape index: {}]   ;;  %s2678_s4 = inlined_call_operand.vmem [shape: f32[1,16], index: 4, kind: input, shape index: {}]   ;;  %s2679_s5 = inlined_call_operand.vmem [shape: f32[128,32], index: 5, kind: output, shape index: {}]  }
   0x1 LB: > { %s1429_s19 = sadd.s32 4294967295, %s1921_s18   ;;  %p1433_p0 = scmp.ge.s32.totalorder %s1921_s18, 1  ;;  %s1921_s18 = sphi %s1961_s18, %s15_s18  }
   0x2   : > { %p188_p1 = scmp.lt.s32.totalorder %s1921_s18, 3 }
   0x4   : > { %p189_p2 = pnand %p1433_p0, %p188_p1 }
   0x5   : > { %s1434_s20 = sshll.u32 (!%p189_p2), %s1429_s19, 3  ;;  %s1924_s6 = smov (!%p189_p2), 16  }
   0x6   : > { %192 = sbr.rel (%p189_p2) target bundleno = 651 (0x28b), region = 40  ;;  %p217_p3 = scmp.lt.s32.totalorder (!%p189_p2), %s1434_s20, 15 }
   0x7   : > { %s1925_s7 = smov (!%p189_p2), 32   ;;  %s1926_s8 = smov (!%p189_p2), 48  }
   0x8   : > { %s1927_s9 = smov (!%p189_p2), 80   ;;  %s1928_s10 = smov (!%p189_p2), 64  }
   0x9   : > { %s1929_s11 = smov (!%p189_p2), 96   ;;  %s1930_s12 = smov (!%p189_p2), 112  }
   0xb   : > { %s2719_s20 = smov (!%p217_p3, %s1434_s20), 15  ;;  %vm397_vm0 = vcmask 130048   ;;  %v1923_v16 = vmov 16.0  }
   0xc   : > { %s1435_s21 = sshll.u32 %s2719_s20, 3  ;;  %1729 = vrcp.f32 %v1923_v16 }
   0xd   : > { %s1977_s24 = scalar_lea.vmem %s2674_s0, %s1435_s21 }
   0xe   : > { %v235_v0 = vld [vmem:[%s1977_s24 + $0x30] sm:$0xff]  ;;  %v1981_v1 = vld [vmem:[%s1977_s24 + $0x20] sm:$0xff]  ;;  %v236_v6 = vld [vmem:[%s1977_s24 + $0x38] sm:$0xff] }
   0xf   : > { %v229_v2 = vld [vmem:[%s1977_s24] sm:$0xff]  ;;  %v416_v3 = vsel %vm397_vm0, %v235_v0, 0.0  ;;  %v410_v4 = vsel %vm397_vm0, %v1981_v1, 0.0  ;;  %v234_v7 = vld [vmem:[%s1977_s24 + $0x28] sm:$0xff]  ;;  %v419_v9 = vsel %vm397_vm0, %v236_v6, 0.0  ;;  %v231_v12 = vld [vmem:[%s1977_s24 + $0x10] sm:$0xff] }
  0x10   : > { %417 = vadd.xlane.f32.xlu2 %v416_v3  ;;  %411 = vadd.xlane.f32.xlu0 %v410_v4  ;;  %v398_v5 = vsel %vm397_vm0, %v229_v2, 0.0  ;;  %v230_v8 = vld [vmem:[%s1977_s24 + $0x8] sm:$0xff]  ;;  %v413_v10 = vsel %vm397_vm0, %v234_v7, 0.0  ;;  %v232_v13 = vld [vmem:[%s1977_s24 + $0x18] sm:$0xff]  ;;  %v404_v14 = vsel %vm397_vm0, %v231_v12, 0.0 }
  0x11   : > { %399 = vadd.xlane.f32.xlu1 %v398_v5  ;;  %v401_v11 = vsel %vm397_vm0, %v230_v8, 0.0  ;;  %v407_v15 = vsel %vm397_vm0, %v232_v13, 0.0 }
  0x12   : > { %v1730_v17 = vpop.eup %1729 }
  0x13   : > { %v423_v18 = vmul.f32 16.0, %v1730_v17  ;;  %vm427_vm1 = vweird.f32 %v1730_v17 }
  0x15   : > { %v424_v19 = vsub.f32 1.0, %v423_v18 }
  0x17   : > { %v425_v20 = vmul.f32 %v1730_v17, %v424_v19 }
  0x18   : > { %420 = vadd.xlane.f32.xlu2 %v419_v9  ;;  %414 = vadd.xlane.f32.xlu0 %v413_v10 }
  0x19   : > { %402 = vadd.xlane.f32.xlu1 %v401_v11  ;;  %v426_v21 = vadd.f32 %v1730_v17, %v425_v20 }
  0x1b   : > { %v1998_v22 = vsel %vm427_vm1, %v1730_v17, %v426_v21 }
  0x20   : > { %405 = vadd.xlane.f32.xlu0 %v404_v14 }
  0x21   : > { %408 = vadd.xlane.f32.xlu1 %v407_v15 }
  0x83   : > { %v418_v23 = vpop.xlane.xlu2 %417  ;;  %v412_v24 = vpop.xlane.xlu0 %411 }
  0x84   : > { %v433_v25 = vmul.f32 %v1998_v22, %v412_v24  ;;  %v400_v26 = vpop.xlane.xlu1 %399  ;;  %v435_v36 = vmul.f32 %v1998_v22, %v418_v23 }
  0x85   : > { %v429_v27 = vmul.f32 %v1998_v22, %v400_v26 }
  0x86   : > { %v2003_v28 = vsub.f32 %v1981_v1, %v433_v25  ;;  %v2023_v44 = vsub.f32 %v235_v0, %v435_v36 }
  0x87   : > { %v2005_v29 = vsub.f32 %v229_v2, %v429_v27 }
  0x88   : > { %v449_v30 = vmul.f32 %v2003_v28, %v2003_v28  ;;  %v451_v53 = vmul.f32 %v2023_v44, %v2023_v44 }
  0x89   : > { %v445_v31 = vmul.f32 %v2005_v29, %v2005_v29 }
  0x8a   : > { %v465_v32 = vsel %vm397_vm0, %v449_v30, 0.0  ;;  %v471_v57 = vsel %vm397_vm0, %v451_v53, 0.0 }
  0x8b   : > { %v421_v33 = vpop.xlane.xlu2 %420  ;;  %466 = vadd.xlane.f32.xlu2 %v465_v32  ;;  %v415_v34 = vpop.xlane.xlu0 %414  ;;  %v453_v35 = vsel %vm397_vm0, %v445_v31, 0.0  ;;  %v2068_v32 = vmul.f32 -1.442695, %v1981_v1 }
  0x8c   : > { %v436_v37 = vmul.f32 %v1998_v22, %v421_v33  ;;  %v434_v38 = vmul.f32 %v1998_v22, %v415_v34  ;;  %454 = vadd.xlane.f32.xlu1 %v453_v35  ;;  %v403_v39 = vpop.xlane.xlu1 %402  ;;  %v1560_v35 = vld [vmem:[%s2675_s1 + $0x40] sm:$0xff] }
  0x8d   : > { %v430_v40 = vmul.f32 %v1998_v22, %v403_v39  ;;  %1343 = vmatpush.bf16.msra.mxu1 %v1560_v35  ;;  %1569 = vmatpush.bf16.msra.mxu3 %v1560_v35 }
  0x8e   : > { %v2017_v41 = vsub.f32 %v236_v6, %v436_v37  ;;  %v2019_v42 = vsub.f32 %v234_v7, %v434_v38 }
  0x8f   : > { %v2021_v43 = vsub.f32 %v230_v8, %v430_v40 }
  0x90   : > { %v450_v45 = vmul.f32 %v2019_v42, %v2019_v42  ;;  %v452_v46 = vmul.f32 %v2017_v41, %v2017_v41 }
  0x91   : > { %v446_v47 = vmul.f32 %v2021_v43, %v2021_v43 }
  0x92   : > { %v468_v48 = vsel %vm397_vm0, %v450_v45, 0.0  ;;  %v474_v49 = vsel %vm397_vm0, %v452_v46, 0.0  ;;  %v2092_v45 = vld [vmem:[%s2677_s3] ss:$0 sm:$0xff] }
  0x93   : > { %469 = vadd.xlane.f32.xlu0 %v468_v48  ;;  %v406_v50 = vpop.xlane.xlu0 %405  ;;  %v456_v51 = vsel %vm397_vm0, %v446_v47, 0.0 }
  0x94   : > { %v431_v52 = vmul.f32 %v1998_v22, %v406_v50  ;;  %475 = vadd.xlane.f32.xlu1 %v474_v49  ;;  %457 = vadd.xlane.f32.xlu2 %v456_v51  ;;  %v409_v54 = vpop.xlane.xlu1 %408  ;;  %v2106_v51 = vld [vmem:[%s2678_s4] ss:$0 sm:$0xff] }
  0x95   : > { %v432_v55 = vmul.f32 %v1998_v22, %v409_v54 }
  0x96   : > { %v2038_v56 = vsub.f32 %v231_v12, %v431_v52 }
  0x97   : > { %v2043_v59 = vsub.f32 %v232_v13, %v432_v55 }
  0x98   : > { %v447_v58 = vmul.f32 %v2038_v56, %v2038_v56 }
  0x99   : > { %v448_v61 = vmul.f32 %v2043_v59, %v2043_v59 }
  0x9a   : > { %v459_v60 = vsel %vm397_vm0, %v447_v58, 0.0 }
  0x9b   : > { %472 = vadd.xlane.f32.xlu0 %v471_v57  ;;  %v462_v62 = vsel %vm397_vm0, %v448_v61, 0.0 }
  0x9c   : > { %460 = vadd.xlane.f32.xlu2 %v459_v60 }
  0xa3   : > { %463 = vadd.xlane.f32.xlu0 %v462_v62 }
  0xfe   : > { %v467_v63 = vpop.xlane.xlu2 %466 }
  0xff   : > { %v481_v0 = vmul.f32 %v467_v63, %v1998_v22  ;;  %v455_v2 = vpop.xlane.xlu1 %454 }
 0x100   : > { %v477_v3 = vmul.f32 %v455_v2, %v1998_v22 }
 0x101   : > { %v489_v4 = vadd.f32 1e-05, %v481_v0 }
 0x102   : > { %v485_v5 = vadd.f32 1e-05, %v477_v3 }
 0x103   : > { %1731 = vrsqrt.f32 %v489_v4  ;;  %vm539_vm5 = vweird.f32 %v489_v4 }
 0x104   : > { %1733 = vrsqrt.f32 %v485_v5  ;;  %vm499_vm2 = vweird.f32 %v485_v5 }
 0x106   : > { %v470_v6 = vpop.xlane.xlu0 %469 }
 0x107   : > { %v482_v7 = vmul.f32 %v470_v6, %v1998_v22  ;;  %v458_v8 = vpop.xlane.xlu2 %457  ;;  %v476_v9 = vpop.xlane.xlu1 %475 }
 0x108   : > { %v478_v10 = vmul.f32 %v458_v8, %v1998_v22  ;;  %v484_v11 = vmul.f32 %v476_v9, %v1998_v22 }
 0x109   : > { %v1732_v12 = vpop.eup %1731  ;;  %v2054_v13 = vadd.f32 1e-05, %v482_v7 }
 0x10a   : > { %v1734_v14 = vpop.eup %1733  ;;  %v534_v15 = vmul.f32 %v1732_v12, %v489_v4  ;;  %v2056_v16 = vadd.f32 1e-05, %v478_v10  ;;  %v2058_v17 = vadd.f32 1e-05, %v484_v11  ;;  %vm540_vm4 = vweird.f32 %v1732_v12 }
 0x10b   : > { %v494_v18 = vmul.f32 %v1734_v14, %v485_v5  ;;  %1735 = vrsqrt.f32 %v2054_v13  ;;  %vm500_vm3 = vweird.f32 %v1734_v14  ;;  %vm549_vm7 = vweird.f32 %v2054_v13  ;;  %vm541_vm8 = vmor %vm539_vm5, %vm540_vm4 }
 0x10c   : > { %v535_v19 = vmul.f32 %v1732_v12, %v534_v15  ;;  %1737 = vrsqrt.f32 %v2056_v16  ;;  %vm2078_vm6 = vmor %vm499_vm2, %vm500_vm3  ;;  %vm509_vm9 = vweird.f32 %v2056_v16  ;;  %vm569_vm10 = vweird.f32 %v2058_v17 }
 0x10d   : > { %v495_v20 = vmul.f32 %v1734_v14, %v494_v18  ;;  %1739 = vrsqrt.f32 %v2058_v17 }
 0x10e   : > { %v536_v21 = vmul.f32 0.5, %v535_v19  ;;  %v473_v23 = vpop.xlane.xlu0 %472 }
 0x10f   : > { %v496_v24 = vmul.f32 0.5, %v495_v20  ;;  %v483_v25 = vmul.f32 %v473_v23, %v1998_v22  ;;  %v461_v26 = vpop.xlane.xlu2 %460 }
 0x110   : > { %v537_v27 = vsub.f32 1.5, %v536_v21  ;;  %v479_v30 = vmul.f32 %v461_v26, %v1998_v22 }
 0x111   : > { %v2065_v31 = vpop.eup %1735  ;;  %v497_v33 = vsub.f32 1.5, %v496_v24  ;;  %v2070_v34 = vadd.f32 1e-05, %v483_v25 }
 0x112   : > { %v2075_v36 = vpop.eup %1737  ;;  %v538_v37 = vmul.f32 %v1732_v12, %v537_v27  ;;  %v544_v1 = vmul.f32 %v2065_v31, %v2054_v13  ;;  %v2085_v39 = vadd.f32 1e-05, %v479_v30  ;;  %vm550_vm11 = vweird.f32 %v2065_v31 }
 0x113   : > { %v2087_v40 = vpop.eup %1739  ;;  %v498_v46 = vmul.f32 %v1734_v14, %v497_v33  ;;  %v504_v47 = vmul.f32 %v2075_v36, %v2056_v16  ;;  %1741 = vrsqrt.f32 %v2070_v34  ;;  %vm510_vm12 = vweird.f32 %v2075_v36  ;;  %vm2128_vm14 = vmor %vm549_vm7, %vm550_vm11 }
 0x114   : > { %v542_v48 = vsel %vm541_vm8, %v1732_v12, %v538_v37  ;;  %v545_v49 = vmul.f32 %v2065_v31, %v544_v1  ;;  %v564_v50 = vmul.f32 %v2087_v40, %v2058_v17  ;;  %1743 = vrsqrt.f32 %v2085_v39  ;;  %vm2138_vm1 = vmor %vm509_vm9, %vm510_vm12 }
 0x115   : > { %v577_v52 = vmul.f32 %v542_v48, %v2003_v28  ;;  %v502_v53 = vsel %vm2078_vm6, %v1734_v14, %v498_v46  ;;  %v505_v54 = vmul.f32 %v2075_v36, %v504_v47  ;;  %vm570_vm13 = vweird.f32 %v2087_v40 }
 0x116   : > { %v573_v55 = vmul.f32 %v502_v53, %v2005_v29  ;;  %v546_v57 = vmul.f32 0.5, %v545_v49  ;;  %v565_v58 = vmul.f32 %v2087_v40, %v564_v50  ;;  %v464_v60 = vpop.xlane.xlu0 %463  ;;  %vm559_vm15 = vweird.f32 %v2070_v34  ;;  %vm2150_vm3 = vmor %vm569_vm10, %vm570_vm13 }
 0x117   : > { %v589_v61 = vmul.f32 %v2092_v45, %v577_v52  ;;  %v506_v62 = vmul.f32 0.5, %v505_v54  ;;  %v480_v28 = vmul.f32 %v464_v60, %v1998_v22  ;;  %vm519_vm2 = vweird.f32 %v2085_v39 }
 0x118   : > { %v585_v63 = vmul.f32 %v2092_v45, %v573_v55  ;;  %v547_v0 = vsub.f32 1.5, %v546_v57  ;;  %v566_v2 = vmul.f32 0.5, %v565_v58 }
 0x119   : > { %v1742_v29 = vpop.eup %1741  ;;  %v2122_v3 = vadd.f32 %v2106_v51, %v589_v61  ;;  %v507_v5 = vsub.f32 1.5, %v506_v62  ;;  %v2133_v22 = vadd.f32 1e-05, %v480_v28 }
 0x11a   : > { %v548_v6 = vmul.f32 %v2065_v31, %v547_v0  ;;  %v567_v8 = vsub.f32 1.5, %v566_v2  ;;  %v554_v9 = vmul.f32 %v1742_v29, %v2070_v34  ;;  %v2145_v10 = vadd.f32 %v2106_v51, %v585_v63  ;;  %v1744_v13 = vpop.eup %1743 }
 0x11b   : > { %v508_v11 = vmul.f32 %v2075_v36, %v507_v5  ;;  %vm560_vm4 = vweird.f32 %v1742_v29  ;;  %1745 = vrsqrt.f32 %v2133_v22  ;;  %v1450_v18 = vadd.f32 2.0, %v2122_v3 }
 0x11c   : > { %v552_v14 = vsel %vm2128_vm14, %v2065_v31, %v548_v6  ;;  %v568_v15 = vmul.f32 %v2087_v40, %v567_v8  ;;  %v555_v16 = vmul.f32 %v1742_v29, %v554_v9  ;;  %v514_v20 = vmul.f32 %v1744_v13, %v2085_v39  ;;  %vm2182_vm7 = vmor %vm559_vm15, %vm560_vm4 }
 0x11d   : > { %v578_v19 = vmul.f32 %v552_v14, %v2019_v42  ;;  %v512_v17 = vsel %vm2138_vm1, %v2075_v36, %v508_v11  ;;  %vm520_vm5 = vweird.f32 %v1744_v13  ;;  %vm529_vm6 = vweird.f32 %v2133_v22 }
 0x11e   : > { %v574_v21 = vmul.f32 %v512_v17, %v2021_v43  ;;  %v572_v23 = vsel %vm2150_vm3, %v2087_v40, %v568_v15  ;;  %v556_v24 = vmul.f32 0.5, %v555_v16  ;;  %v617_v25 = vmul.f32 %v1450_v18, %v1450_v18  ;;  %vm2199_vm9 = vmor %vm519_vm2, %vm520_vm5 }
 0x11f   : > { %v590_v26 = vmul.f32 %v2092_v45, %v578_v19  ;;  %v580_v42 = vmul.f32 %v572_v23, %v2017_v41  ;;  %v515_v27 = vmul.f32 %v1744_v13, %v514_v20  ;;  %v1458_v30 = vadd.f32 1.4285715, %v2122_v3 }
 0x120   : > { %v586_v31 = vmul.f32 %v2092_v45, %v574_v21  ;;  %v557_v33 = vsub.f32 1.5, %v556_v24  ;;  %v625_v35 = vsub.f32 0.0, %v617_v25  ;;  %v1466_v43 = vadd.f32 0.85714287, %v2122_v3 }
 0x121   : > { %v1746_v36 = vpop.eup %1745  ;;  %v2176_v37 = vadd.f32 %v2106_v51, %v590_v26  ;;  %v592_v38 = vmul.f32 %v2092_v45, %v580_v42  ;;  %v516_v1 = vmul.f32 0.5, %v515_v27  ;;  %v657_v40 = vmul.f32 %v1458_v30, %v1458_v30 }
 0x122   : > { %v2187_v46 = vadd.f32 %v2106_v51, %v586_v31  ;;  %v558_v47 = vmul.f32 %v1742_v29, %v557_v33  ;;  %v524_v48 = vmul.f32 %v1746_v36, %v2133_v22  ;;  %vm530_vm8 = vweird.f32 %v1746_v36 }
 0x123   : > { %v2191_v49 = vadd.f32 %v2106_v51, %v592_v38  ;;  %v517_v50 = vsub.f32 1.5, %v516_v1  ;;  %v1451_v52 = vadd.f32 2.0, %v2176_v37  ;;  %v637_v34 = vmul.f32 1.442695, %v625_v35  ;;  %vm2216_vm10 = vmor %vm529_vm6, %vm530_vm8 }
 0x124   : > { %v562_v53 = vsel %vm2182_vm7, %v1742_v29, %v558_v47  ;;  %v525_v55 = vmul.f32 %v1746_v36, %v524_v48  ;;  %v1459_v57 = vadd.f32 1.4285715, %v2176_v37  ;;  %v665_v58 = vsub.f32 0.0, %v657_v40 }
 0x125   : > { %v579_v60 = vmul.f32 %v562_v53, %v2023_v44  ;;  %v518_v61 = vmul.f32 %v1744_v13, %v517_v50  ;;  %v618_v62 = vmul.f32 %v1451_v52, %v1451_v52  ;;  %1747 = vpow2.f32 %v637_v34 }
 0x126   : > { %v526_v28 = vmul.f32 0.5, %v525_v55  ;;  %v658_v63 = vmul.f32 %v1459_v57, %v1459_v57  ;;  %v677_v0 = vmul.f32 1.442695, %v665_v58  ;;  %v1467_v2 = vadd.f32 0.85714287, %v2176_v37 }
 0x127   : > { %v591_v39 = vmul.f32 %v2092_v45, %v579_v60  ;;  %v522_v29 = vsel %vm2199_vm9, %v1744_v13, %v518_v61  ;;  %v626_v4 = vsub.f32 0.0, %v618_v62  ;;  %v697_v5 = vmul.f32 %v1466_v43, %v1466_v43 }
 0x128   : > { %v575_v6 = vmul.f32 %v522_v29, %v2038_v56  ;;  %v527_v7 = vsub.f32 1.5, %v526_v28  ;;  %v666_v8 = vsub.f32 0.0, %v658_v63  ;;  %1749 = vpow2.f32 %v677_v0 }
 0x129   : > { %v2211_v44 = vadd.f32 %v2106_v51, %v591_v39  ;;  %v639_v11 = vmul.f32 1.442695, %v626_v4  ;;  %v698_v12 = vmul.f32 %v1467_v2, %v1467_v2  ;;  %v705_v13 = vsub.f32 0.0, %v697_v5 }
 0x12a   : > { %v587_v14 = vmul.f32 %v2092_v45, %v575_v6  ;;  %v528_v15 = vmul.f32 %v1746_v36, %v527_v7  ;;  %v679_v56 = vmul.f32 1.442695, %v666_v8  ;;  %v1502_v16 = vadd.f32 -2.0, %v2145_v10 }
 0x12b   : > { %v1748_v18 = vpop.eup %1747  ;;  %1751 = vpow2.f32 %v639_v11  ;;  %v706_v19 = vsub.f32 0.0, %v698_v12  ;;  %v717_v17 = vmul.f32 1.442695, %v705_v13  ;;  %v1503_v20 = vadd.f32 -2.0, %v2187_v46 }
 0x12c   : > { %v2224_v22 = vadd.f32 %v2106_v51, %v587_v14  ;;  %v532_v21 = vsel %vm2216_vm10, %v1746_v36, %v528_v15  ;;  %1753 = vpow2.f32 %v679_v56  ;;  %v893_v23 = vmul.f32 %v1502_v16, %v1502_v16 }
 0x12d   : > { %v576_v24 = vmul.f32 %v532_v21, %v2043_v59  ;;  %1755 = vpow2.f32 %v717_v17  ;;  %v719_v25 = vmul.f32 1.442695, %v706_v19  ;;  %v894_v26 = vmul.f32 %v1503_v20, %v1503_v20 }
 0x12e   : > { %v1750_v42 = vpop.eup %1749  ;;  %v901_v27 = vsub.f32 0.0, %v893_v23  ;;  %v1482_v30 = vadd.f32 -0.2857143, %v2122_v3  ;;  %v1483_v31 = vadd.f32 -0.2857143, %v2176_v37  ;;  %v1504_v33 = vadd.f32 -2.0, %v2224_v22 }
 0x12f   : > { %v588_v35 = vmul.f32 %v2092_v45, %v576_v24  ;;  %1757 = vpow2.f32 %v719_v25  ;;  %v902_v43 = vsub.f32 0.0, %v894_v26  ;;  %v1474_v36 = vadd.f32 0.2857143, %v2122_v3 }
 0x130   : > { %v909_v38 = vmul.f32 1.442695, %v901_v27  ;;  %v777_v41 = vmul.f32 %v1482_v30, %v1482_v30  ;;  %v778_v59 = vmul.f32 %v1483_v31, %v1483_v31  ;;  %v1475_v1 = vadd.f32 0.2857143, %v2176_v37 }
 0x131   : > { %v1752_v40 = vpop.eup %1751  ;;  %v2236_v47 = vadd.f32 %v2106_v51, %v588_v35  ;;  %v911_v48 = vmul.f32 1.442695, %v902_v43  ;;  %v737_v50 = vmul.f32 %v1474_v36, %v1474_v36  ;;  %v1490_v52 = vadd.f32 -0.85714287, %v2122_v3 }
 0x132   : > { %v1754_v34 = vpop.eup %1753  ;;  %v1586_v53 = vpack.i.bf16 %v1752_v40, %v1748_v18  ;;  %1759 = vpow2.f32 %v909_v38  ;;  %v785_v45 = vsub.f32 0.0, %v777_v41  ;;  %v786_v54 = vsub.f32 0.0, %v778_v59 }
 0x133   : > { %v1756_v55 = vpop.eup %1755  ;;  %v1591_v57 = vpack.i.bf16 %v1754_v34, %v1750_v42  ;;  %1761 = vpow2.f32 %v911_v48  ;;  %v738_v58 = vmul.f32 %v1475_v1, %v1475_v1  ;;  %v745_v60 = vsub.f32 0.0, %v737_v50 }
 0x134   : > { %1587 = vrot.lane.b32.xlu1 %v1586_v53, %s1924_s6  ;;  %v797_v61 = vmul.f32 1.442695, %v785_v45  ;;  %v799_v51 = vmul.f32 1.442695, %v786_v54  ;;  %v1491_v62 = vadd.f32 -0.85714287, %v2176_v37  ;;  %v817_v28 = vmul.f32 %v1490_v52, %v1490_v52 }
 0x135   : > { %v1758_v63 = vpop.eup %1757  ;;  %1592 = vrot.lane.b32.xlu2 %v1591_v57, %s1925_s7  ;;  %v746_v0 = vsub.f32 0.0, %v738_v58  ;;  %v757_v2 = vmul.f32 1.442695, %v745_v60  ;;  %v1498_v39 = vadd.f32 -1.4285715, %v2122_v3  ;;  %v1505_v29 = vadd.f32 -2.0, %v2236_v47 }
 0x136   : > { %v1596_v4 = vpack.i.bf16 %v1758_v63, %v1756_v55  ;;  %1763 = vpow2.f32 %v797_v61  ;;  %v818_v5 = vmul.f32 %v1491_v62, %v1491_v62  ;;  %v825_v6 = vsub.f32 0.0, %v817_v28 }
 0x137   : > { %1765 = vpow2.f32 %v799_v51  ;;  %v759_v7 = vmul.f32 1.442695, %v746_v0  ;;  %v1499_v8 = vadd.f32 -1.4285715, %v2176_v37  ;;  %v857_v9 = vmul.f32 %v1498_v39, %v1498_v39 }
 0x138   : > { %v1760_v11 = vpop.eup %1759  ;;  %1597 = vrot.lane.b32.xlu0 %v1596_v4, %s1926_s8  ;;  %1767 = vpow2.f32 %v757_v2  ;;  %v826_v12 = vsub.f32 0.0, %v818_v5  ;;  %v837_v13 = vmul.f32 1.442695, %v825_v6  ;;  %v895_v14 = vmul.f32 %v1504_v33, %v1504_v33 }
 0x139   : > { %v1762_v15 = vpop.eup %1761  ;;  %1769 = vpow2.f32 %v759_v7  ;;  %v858_v56 = vmul.f32 %v1499_v8, %v1499_v8  ;;  %v865_v16 = vsub.f32 0.0, %v857_v9  ;;  %v896_v18 = vmul.f32 %v1505_v29, %v1505_v29 }
 0x13a   : > { %v1212_v19 = vpack.c.bf16 %v1762_v15, %v1760_v11  ;;  %1771 = vpow2.f32 %v837_v13  ;;  %v839_v17 = vmul.f32 1.442695, %v826_v12  ;;  %v903_v20 = vsub.f32 0.0, %v895_v14 }
 0x13b   : > { %v866_v21 = vsub.f32 0.0, %v858_v56  ;;  %v877_v23 = vmul.f32 1.442695, %v865_v16  ;;  %v904_v24 = vsub.f32 0.0, %v896_v18  ;;  %v1454_v25 = vadd.f32 1.4285715, %v2145_v10 }
 0x13c   : > { %v1764_v26 = vpop.eup %1763  ;;  %1546 = vmatmul.msk.bf16.vlgmr.msra.gmra.mxu1 %vm397_vm0, %v1212_v19  ;;  %1773 = vpow2.f32 %v839_v17  ;;  %v913_v42 = vmul.f32 1.442695, %v903_v20  ;;  %v1455_v27 = vadd.f32 1.4285715, %v2187_v46  ;;  %v1446_v30 = vadd.f32 2.0, %v2145_v10 }
 0x13d   : > { %v1766_v31 = vpop.eup %1765  ;;  %1775 = vpow2.f32 %v877_v23  ;;  %v879_v33 = vmul.f32 1.442695, %v866_v21  ;;  %v915_v35 = vmul.f32 1.442695, %v904_v24  ;;  %v653_v43 = vmul.f32 %v1454_v25, %v1454_v25 }
 0x13e   : > { %v1768_v36 = vpop.eup %1767  ;;  %v1606_v38 = vpack.i.bf16 %v1766_v31, %v1764_v26  ;;  %1777 = vpow2.f32 %v913_v42  ;;  %v654_v41 = vmul.f32 %v1455_v27, %v1455_v27  ;;  %v1447_v59 = vadd.f32 2.0, %v2187_v46 }
 0x13f   : > { %v1770_v1 = vpop.eup %1769  ;;  %1779 = vpow2.f32 %v879_v33  ;;  %v661_v40 = vsub.f32 0.0, %v653_v43  ;;  %v613_v48 = vmul.f32 %v1446_v30, %v1446_v30  ;;  %v1470_v50 = vadd.f32 0.2857143, %v2145_v10 }
 0x140   : > { %v1772_v52 = vpop.eup %1771  ;;  %1607 = vrot.lane.b32.xlu1 %v1606_v38, %s1927_s9  ;;  %v1601_v34 = vpack.i.bf16 %v1770_v1, %v1768_v36  ;;  %1781 = vpow2.f32 %v915_v35  ;;  %v662_v53 = vsub.f32 0.0, %v654_v41  ;;  %v614_v45 = vmul.f32 %v1447_v59, %v1447_v59 }
 0x141   : > { %v669_v54 = vmul.f32 1.442695, %v661_v40  ;;  %v621_v55 = vsub.f32 0.0, %v613_v48  ;;  %v1471_v57 = vadd.f32 0.2857143, %v2187_v46  ;;  %v733_v58 = vmul.f32 %v1470_v50, %v1470_v50 }
 0x142   : > { %v1774_v60 = vpop.eup %1773  ;;  %1602 = vrot.lane.b32.xlu2 %v1601_v34, %s1928_s10  ;;  %v671_v61 = vmul.f32 1.442695, %v662_v53  ;;  %v622_v51 = vsub.f32 0.0, %v614_v45  ;;  %v1478_v62 = vadd.f32 -0.2857143, %v2145_v10  ;;  %v1506_v28 = vadd.f32 -2.0, %v2122_v3 }
 0x143   : > { %v1776_v63 = vpop.eup %1775  ;;  %v1611_v0 = vpack.i.bf16 %v1774_v60, %v1772_v52  ;;  %1783 = vpow2.f32 %v669_v54  ;;  %v629_v2 = vmul.f32 1.442695, %v621_v55  ;;  %v734_v39 = vmul.f32 %v1471_v57, %v1471_v57 }
 0x144   : > { %v1778_v29 = vpop.eup %1777  ;;  %1785 = vpow2.f32 %v671_v61  ;;  %v631_v4 = vmul.f32 1.442695, %v622_v51  ;;  %v741_v5 = vsub.f32 0.0, %v733_v58  ;;  %v1479_v6 = vadd.f32 -0.2857143, %v2187_v46 }
 0x145   : > { %v1780_v7 = vpop.eup %1779  ;;  %1612 = vrot.lane.b32.xlu0 %v1611_v0, %s1929_s11  ;;  %1787 = vpow2.f32 %v629_v2  ;;  %v742_v8 = vsub.f32 0.0, %v734_v39  ;;  %v773_v9 = vmul.f32 %v1478_v62, %v1478_v62  ;;  %v1462_v3 = vadd.f32 0.85714287, %v2145_v10 }
 0x146   : > { %v1782_v11 = vpop.eup %1781  ;;  %v1621_v12 = vpack.i.bf16 %v1780_v7, %v1776_v63  ;;  %1789 = vpow2.f32 %v631_v4  ;;  %v749_v13 = vmul.f32 1.442695, %v741_v5  ;;  %v774_v14 = vmul.f32 %v1479_v6, %v1479_v6 }
 0x147   : > { %v1214_v15 = vpack.c.bf16 %v1782_v11, %v1778_v29  ;;  %v751_v56 = vmul.f32 1.442695, %v742_v8  ;;  %v781_v16 = vsub.f32 0.0, %v773_v9  ;;  %v1463_v18 = vadd.f32 0.85714287, %v2187_v46 }
 0x148   : > { %1622 = vrot.lane.b32.xlu1 %v1621_v12, %s1930_s12  ;;  %1791 = vpow2.f32 %v749_v13  ;;  %v782_v19 = vsub.f32 0.0, %v774_v14  ;;  %v693_v17 = vmul.f32 %v1462_v3, %v1462_v3  ;;  %v1507_v20 = vadd.f32 -2.0, %v2176_v37 }
 0x149   : > { %v1784_v21 = vpop.eup %1783  ;;  %1547 = vmatmul.msk.bf16.vlgmr.msra.gmra.mxu3 %vm397_vm0, %v1214_v15  ;;  %1793 = vpow2.f32 %v751_v56  ;;  %v789_v23 = vmul.f32 1.442695, %v781_v16  ;;  %v694_v24 = vmul.f32 %v1463_v18, %v1463_v18  ;;  %v897_v25 = vmul.f32 %v1506_v28, %v1506_v28 }
 0x14a   : > { %v1786_v26 = vpop.eup %1785  ;;  %v791_v42 = vmul.f32 1.442695, %v782_v19  ;;  %v701_v27 = vsub.f32 0.0, %v693_v17  ;;  %v898_v30 = vmul.f32 %v1507_v20, %v1507_v20  ;;  %v1494_v31 = vadd.f32 -1.4285715, %v2145_v10 }
 0x14b   : > { %v1788_v33 = vpop.eup %1787  ;;  %v1626_v35 = vpack.i.bf16 %v1786_v26, %v1784_v21  ;;  %1795 = vpow2.f32 %v789_v23  ;;  %v702_v43 = vsub.f32 0.0, %v694_v24  ;;  %v905_v36 = vsub.f32 0.0, %v897_v25 }
 0x14c   : > { %v1790_v38 = vpop.eup %1789  ;;  %1797 = vpow2.f32 %v791_v42  ;;  %v709_v37 = vmul.f32 1.442695, %v701_v27  ;;  %v906_v41 = vsub.f32 0.0, %v898_v30  ;;  %v1495_v59 = vadd.f32 -1.4285715, %v2187_v46 }
 0x14d   : > { %1627 = vrot.lane.b32.xlu0 %v1626_v35, %s1925_s7  ;;  %v1616_v1 = vpack.i.bf16 %v1790_v38, %v1788_v33  ;;  %v711_v40 = vmul.f32 1.442695, %v702_v43  ;;  %v917_v48 = vmul.f32 1.442695, %v905_v36  ;;  %v853_v50 = vmul.f32 %v1494_v31, %v1494_v31 }
 0x14e   : > { %v1792_v52 = vpop.eup %1791  ;;  %1799 = vpow2.f32 %v709_v37  ;;  %v919_v34 = vmul.f32 1.442695, %v906_v41  ;;  %v854_v53 = vmul.f32 %v1495_v59, %v1495_v59  ;;  %v1486_v45 = vadd.f32 -0.85714287, %v2145_v10 }
 0x14f   : > { %v1794_v54 = vpop.eup %1793  ;;  %1617 = vrot.lane.b32.xlu2 %v1616_v1, %s1924_s6  ;;  %1801 = vpow2.f32 %v711_v40  ;;  %v861_v55 = vsub.f32 0.0, %v853_v50  ;;  %v1487_v57 = vadd.f32 -0.85714287, %v2187_v46  ;;  %v1452_v58 = vadd.f32 2.0, %v2211_v44 }
 0x150   : > { %v1636_v60 = vpack.i.bf16 %v1794_v54, %v1792_v52  ;;  %1803 = vpow2.f32 %v917_v48  ;;  %v862_v61 = vsub.f32 0.0, %v854_v53  ;;  %v813_v51 = vmul.f32 %v1486_v45, %v1486_v45 }
 0x151   : > { %v1796_v62 = vpop.eup %1795  ;;  %1805 = vpow2.f32 %v919_v34  ;;  %v869_v28 = vmul.f32 1.442695, %v861_v55  ;;  %v814_v63 = vmul.f32 %v1487_v57, %v1487_v57  ;;  %v1453_v0 = vadd.f32 2.0, %v2191_v49 }
 0x152   : > { %v1798_v10 = vpop.eup %1797  ;;  %1637 = vrot.lane.b32.xlu1 %v1636_v60, %s1928_s10  ;;  %v871_v2 = vmul.f32 1.442695, %v862_v61  ;;  %v821_v39 = vsub.f32 0.0, %v813_v51  ;;  %v619_v29 = vmul.f32 %v1452_v58, %v1452_v58  ;;  %v1468_v46 = vadd.f32 0.85714287, %v2211_v44 }
 0x153   : > { %v1641_v4 = vpack.i.bf16 %v1798_v10, %v1796_v62  ;;  %1807 = vpow2.f32 %v869_v28  ;;  %v822_v5 = vsub.f32 0.0, %v814_v63  ;;  %v620_v6 = vmul.f32 %v1453_v0, %v1453_v0 }
 0x154   : > { %v1800_v7 = vpop.eup %1799  ;;  %1809 = vpow2.f32 %v871_v2  ;;  %v829_v8 = vmul.f32 1.442695, %v821_v39  ;;  %v627_v9 = vsub.f32 0.0, %v619_v29  ;;  %v1469_v3 = vadd.f32 0.85714287, %v2191_v49 }
 0x155   : > { %v1802_v11 = vpop.eup %1801  ;;  %1642 = vrot.lane.b32.xlu0 %v1641_v4, %s1927_s9  ;;  %v831_v12 = vmul.f32 1.442695, %v822_v5  ;;  %v628_v13 = vsub.f32 0.0, %v620_v6  ;;  %v699_v14 = vmul.f32 %v1468_v46, %v1468_v46  ;;  %v1460_v15 = vadd.f32 1.4285715, %v2211_v44 }
 0x156   : > { %v1804_v56 = vpop.eup %1803  ;;  %v1631_v16 = vpack.i.bf16 %v1802_v11, %v1800_v7  ;;  %1811 = vpow2.f32 %v829_v8  ;;  %v641_v18 = vmul.f32 1.442695, %v627_v9  ;;  %v700_v19 = vmul.f32 %v1469_v3, %v1469_v3 }
 0x157   : > { %v1806_v17 = vpop.eup %1805  ;;  %1813 = vpow2.f32 %v831_v12  ;;  %v643_v20 = vmul.f32 1.442695, %v628_v13  ;;  %v707_v21 = vsub.f32 0.0, %v699_v14  ;;  %v1461_v23 = vadd.f32 1.4285715, %v2191_v49 }
 0x158   : > { %1632 = vrot.lane.b32.xlu2 %v1631_v16, %s1926_s8  ;;  %v1216_v24 = vpack.c.bf16 %v1806_v17, %v1804_v56  ;;  %1815 = vpow2.f32 %v641_v18  ;;  %v708_v25 = vsub.f32 0.0, %v700_v19  ;;  %v659_v26 = vmul.f32 %v1460_v15, %v1460_v15 }
 0x159   : > { %v1808_v42 = vpop.eup %1807  ;;  %1817 = vpow2.f32 %v643_v20  ;;  %v721_v27 = vmul.f32 1.442695, %v707_v21  ;;  %v660_v30 = vmul.f32 %v1461_v23, %v1461_v23  ;;  %v1476_v31 = vadd.f32 0.2857143, %v2211_v44 }
 0x15a   : > { %v1810_v33 = vpop.eup %1809  ;;  %1548 = vmatmul.msk.bf16.gmra.mxu3 %vm397_vm0, %v1216_v24  ;;  %v723_v35 = vmul.f32 1.442695, %v708_v25  ;;  %v667_v43 = vsub.f32 0.0, %v659_v26  ;;  %v1477_v36 = vadd.f32 0.2857143, %v2191_v49  ;;  %v1508_v38 = vadd.f32 -2.0, %v2211_v44 }
 0x15b   : > { %v1651_v37 = vpack.i.bf16 %v1810_v33, %v1808_v42  ;;  %1819 = vpow2.f32 %v721_v27  ;;  %v668_v41 = vsub.f32 0.0, %v660_v30  ;;  %v739_v59 = vmul.f32 %v1476_v31, %v1476_v31 }
 0x15c   : > { %v1812_v1 = vpop.eup %1811  ;;  %1821 = vpow2.f32 %v723_v35  ;;  %v681_v40 = vmul.f32 1.442695, %v667_v43  ;;  %v740_v48 = vmul.f32 %v1477_v36, %v1477_v36  ;;  %v1509_v50 = vadd.f32 -2.0, %v2191_v49 }
 0x15d   : > { %v1814_v52 = vpop.eup %1813  ;;  %1652 = vrot.lane.b32.xlu1 %v1651_v37, %s1930_s12  ;;  %v683_v34 = vmul.f32 1.442695, %v668_v41  ;;  %v747_v53 = vsub.f32 0.0, %v739_v59  ;;  %v899_v45 = vmul.f32 %v1508_v38, %v1508_v38  ;;  %v1492_v54 = vadd.f32 -0.85714287, %v2211_v44 }
 0x15e   : > { %v1816_v55 = vpop.eup %1815  ;;  %v1646_v57 = vpack.i.bf16 %v1814_v52, %v1812_v1  ;;  %1823 = vpow2.f32 %v681_v40  ;;  %v748_v58 = vsub.f32 0.0, %v740_v48  ;;  %v900_v60 = vmul.f32 %v1509_v50, %v1509_v50 }
 0x15f   : > { %v1818_v61 = vpop.eup %1817  ;;  %1825 = vpow2.f32 %v683_v34  ;;  %v761_v51 = vmul.f32 1.442695, %v747_v53  ;;  %v907_v62 = vsub.f32 0.0, %v899_v45  ;;  %v1493_v28 = vadd.f32 -0.85714287, %v2191_v49 }
 0x160   : > { %1647 = vrot.lane.b32.xlu2 %v1646_v57, %s1929_s11  ;;  %v1656_v63 = vpack.i.bf16 %v1818_v61, %v1816_v55  ;;  %v763_v0 = vmul.f32 1.442695, %v748_v58  ;;  %v908_v10 = vsub.f32 0.0, %v900_v60  ;;  %v819_v2 = vmul.f32 %v1492_v54, %v1492_v54 }
 0x161   : > { %v1820_v39 = vpop.eup %1819  ;;  %1827 = vpow2.f32 %v761_v51  ;;  %v921_v29 = vmul.f32 1.442695, %v907_v62  ;;  %v820_v46 = vmul.f32 %v1493_v28, %v1493_v28  ;;  %v1484_v4 = vadd.f32 -0.2857143, %v2211_v44 }
 0x162   : > { %v1822_v5 = vpop.eup %1821  ;;  %1657 = vrot.lane.b32.xlu0 %v1656_v63, %s1924_s6  ;;  %1829 = vpow2.f32 %v763_v0  ;;  %v923_v6 = vmul.f32 1.442695, %v908_v10  ;;  %v827_v7 = vsub.f32 0.0, %v819_v2  ;;  %v1485_v8 = vadd.f32 -0.2857143, %v2191_v49 }
 0x163   : > { %v1666_v9 = vpack.i.bf16 %v1822_v5, %v1820_v39  ;;  %1831 = vpow2.f32 %v921_v29  ;;  %v828_v3 = vsub.f32 0.0, %v820_v46  ;;  %v779_v11 = vmul.f32 %v1484_v4, %v1484_v4 }
 0x164   : > { %v1824_v12 = vpop.eup %1823  ;;  %1833 = vpow2.f32 %v923_v6  ;;  %v841_v13 = vmul.f32 1.442695, %v827_v7  ;;  %v780_v14 = vmul.f32 %v1485_v8, %v1485_v8  ;;  %v1448_v15 = vadd.f32 2.0, %v2224_v22 }
 0x165   : > { %v1826_v56 = vpop.eup %1825  ;;  %1667 = vrot.lane.b32.xlu1 %v1666_v9, %s1926_s8  ;;  %v843_v16 = vmul.f32 1.442695, %v828_v3  ;;  %v787_v18 = vsub.f32 0.0, %v779_v11  ;;  %v1449_v19 = vadd.f32 2.0, %v2236_v47  ;;  %v1456_v17 = vadd.f32 1.4285715, %v2224_v22 }
 0x166   : > { %v1661_v20 = vpack.i.bf16 %v1826_v56, %v1824_v12  ;;  %1835 = vpow2.f32 %v841_v13  ;;  %v788_v21 = vsub.f32 0.0, %v780_v14  ;;  %v615_v23 = vmul.f32 %v1448_v15, %v1448_v15 }
 0x167   : > { %v1828_v24 = vpop.eup %1827  ;;  %1837 = vpow2.f32 %v843_v16  ;;  %v801_v25 = vmul.f32 1.442695, %v787_v18  ;;  %v616_v26 = vmul.f32 %v1449_v19, %v1449_v19  ;;  %v1457_v42 = vadd.f32 1.4285715, %v2236_v47 }
 0x168   : > { %v1830_v27 = vpop.eup %1829  ;;  %1662 = vrot.lane.b32.xlu2 %v1661_v20, %s1925_s7  ;;  %v803_v30 = vmul.f32 1.442695, %v788_v21  ;;  %v623_v31 = vsub.f32 0.0, %v615_v23  ;;  %v655_v33 = vmul.f32 %v1456_v17, %v1456_v17  ;;  %v1500_v35 = vadd.f32 -1.4285715, %v2211_v44 }
 0x169   : > { %v1832_v43 = vpop.eup %1831  ;;  %v1671_v36 = vpack.i.bf16 %v1830_v27, %v1828_v24  ;;  %1839 = vpow2.f32 %v801_v25  ;;  %v624_v38 = vsub.f32 0.0, %v616_v26  ;;  %v656_v37 = vmul.f32 %v1457_v42, %v1457_v42 }
 0x16a   : > { %v1834_v41 = vpop.eup %1833  ;;  %1841 = vpow2.f32 %v803_v30  ;;  %v633_v59 = vmul.f32 1.442695, %v623_v31  ;;  %v663_v1 = vsub.f32 0.0, %v655_v33  ;;  %v1501_v40 = vadd.f32 -1.4285715, %v2191_v49 }
 0x16b   : > { %1672 = vrot.lane.b32.xlu0 %v1671_v36, %s1928_s10  ;;  %v1218_v48 = vpack.c.bf16 %v1834_v41, %v1832_v43  ;;  %v635_v50 = vmul.f32 1.442695, %v624_v38  ;;  %v664_v52 = vsub.f32 0.0, %v656_v37  ;;  %v859_v34 = vmul.f32 %v1500_v35, %v1500_v35 }
 0x16c   : > { %v1836_v53 = vpop.eup %1835  ;;  %1843 = vpow2.f32 %v633_v59  ;;  %v673_v44 = vmul.f32 1.442695, %v663_v1  ;;  %v860_v45 = vmul.f32 %v1501_v40, %v1501_v40  ;;  %v1464_v54 = vadd.f32 0.85714287, %v2224_v22 }
 0x16d   : > { %v1838_v55 = vpop.eup %1837  ;;  %1549 = vmatmul.msk.bf16.gmra.mxu3 %vm397_vm0, %v1218_v48  ;;  %1845 = vpow2.f32 %v635_v50  ;;  %v675_v57 = vmul.f32 1.442695, %v664_v52  ;;  %v867_v58 = vsub.f32 0.0, %v859_v34  ;;  %v1465_v49 = vadd.f32 0.85714287, %v2236_v47  ;;  %v2316_v50 = vld [vmem:[%s1977_s24 + $0x28] sm:$0xff] }
 0x16e   : > { %v1681_v60 = vpack.i.bf16 %v1838_v55, %v1836_v53  ;;  %1847 = vpow2.f32 %v673_v44  ;;  %v868_v61 = vsub.f32 0.0, %v860_v45  ;;  %v695_v51 = vmul.f32 %v1464_v54, %v1464_v54  ;;  %v1559_v54 = vld [vmem:[%s2675_s1 + $0x38] sm:$0xff] }
 0x16f   : > { %v1840_v62 = vpop.eup %1839  ;;  %1849 = vpow2.f32 %v675_v57  ;;  %v881_v28 = vmul.f32 1.442695, %v867_v58  ;;  %v696_v63 = vmul.f32 %v1465_v49, %v1465_v49  ;;  %v1480_v0 = vadd.f32 -0.2857143, %v2224_v22  ;;  %1561 = vmatpush.bf16.msra.mxu2 %v1559_v54  ;;  %1307 = vmatpush.bf16.msra.mxu0 %v1559_v54 }
 0x170   : > { %v1842_v10 = vpop.eup %1841  ;;  %1682 = vrot.lane.b32.xlu1 %v1681_v60, %s1929_s11  ;;  %v883_v2 = vmul.f32 1.442695, %v868_v61  ;;  %v703_v39 = vsub.f32 0.0, %v695_v51  ;;  %v1481_v29 = vadd.f32 -0.2857143, %v2236_v47  ;;  %vm1157_vm4 = vcmask 261120  }
 0x171   : > { %v1676_v46 = vpack.i.bf16 %v1842_v10, %v1840_v62  ;;  %1851 = vpow2.f32 %v881_v28  ;;  %v704_v4 = vsub.f32 0.0, %v696_v63  ;;  %v775_v5 = vmul.f32 %v1480_v0, %v1480_v0 }
 0x172   : > { %v1844_v6 = vpop.eup %1843  ;;  %1853 = vpow2.f32 %v883_v2  ;;  %v713_v7 = vmul.f32 1.442695, %v703_v39  ;;  %v776_v8 = vmul.f32 %v1481_v29, %v1481_v29  ;;  %v1472_v9 = vadd.f32 0.2857143, %v2224_v22 }
 0x173   : > { %v1846_v3 = vpop.eup %1845  ;;  %1677 = vrot.lane.b32.xlu2 %v1676_v46, %s1927_s9  ;;  %v715_v11 = vmul.f32 1.442695, %v704_v4  ;;  %v783_v12 = vsub.f32 0.0, %v775_v5  ;;  %v1473_v13 = vadd.f32 0.2857143, %v2236_v47  ;;  %v1558_v4 = vld [vmem:[%s2675_s1 + $0x30] sm:$0xff] }
 0x174   : > { %v1848_v14 = vpop.eup %1847  ;;  %v1686_v15 = vpack.i.bf16 %v1846_v3, %v1844_v6  ;;  %1855 = vpow2.f32 %v713_v7  ;;  %v784_v56 = vsub.f32 0.0, %v776_v8  ;;  %v735_v16 = vmul.f32 %v1472_v9, %v1472_v9  ;;  %1562 = vmatpush.bf16.msra.mxu2 %v1558_v4  ;;  %v1557_v5 = vld [vmem:[%s2675_s1 + $0x28] sm:$0xff]  ;;  %1308 = vmatpush.bf16.msra.mxu0 %v1558_v4  ;;  %v2342_v6 = vld [vmem:[%s1977_s24] sm:$0xff] }
 0x175   : > { %v1850_v18 = vpop.eup %1849  ;;  %1857 = vpow2.f32 %v715_v11  ;;  %v793_v19 = vmul.f32 1.442695, %v783_v12  ;;  %v736_v17 = vmul.f32 %v1473_v13, %v1473_v13  ;;  %v1488_v20 = vadd.f32 -0.85714287, %v2224_v22  ;;  %v2346_v8 = vld [vmem:[%s1977_s24 + $0x8] sm:$0xff]  ;;  %v1556_v12 = vld [vmem:[%s2675_s1 + $0x20] sm:$0xff] }
 0x176   : > { %1687 = vrot.lane.b32.xlu0 %v1686_v15, %s1924_s6  ;;  %v1696_v21 = vpack.i.bf16 %v1850_v18, %v1848_v14  ;;  %v795_v23 = vmul.f32 1.442695, %v784_v56  ;;  %v743_v24 = vsub.f32 0.0, %v735_v16  ;;  %v1489_v25 = vadd.f32 -0.85714287, %v2236_v47  ;;  %v1555_v15 = vld [vmem:[%s2675_s1 + $0x18] sm:$0xff] }
 0x177   : > { %v1852_v26 = vpop.eup %1851  ;;  %1859 = vpow2.f32 %v793_v19  ;;  %v744_v42 = vsub.f32 0.0, %v736_v17  ;;  %v815_v27 = vmul.f32 %v1488_v20, %v1488_v20  ;;  %v1496_v30 = vadd.f32 -1.4285715, %v2224_v22  ;;  %v1554_v20 = vld [vmem:[%s2675_s1 + $0x10] sm:$0xff] }
 0x178   : > { %v1854_v31 = vpop.eup %1853  ;;  %1697 = vrot.lane.b32.xlu1 %v1696_v21, %s1925_s7  ;;  %1861 = vpow2.f32 %v795_v23  ;;  %v753_v33 = vmul.f32 1.442695, %v743_v24  ;;  %v816_v35 = vmul.f32 %v1489_v25, %v1489_v25  ;;  %v1497_v43 = vadd.f32 -1.4285715, %v2236_v47  ;;  %1563 = vmatpush.bf16.msra.mxu2 %v1557_v5 }
 0x179   : > { %v1691_v36 = vpack.i.bf16 %v1854_v31, %v1852_v26  ;;  %v755_v38 = vmul.f32 1.442695, %v744_v42  ;;  %v823_v37 = vsub.f32 0.0, %v815_v27  ;;  %v855_v41 = vmul.f32 %v1496_v30, %v1496_v30  ;;  %1309 = vmatpush.bf16.msra.mxu0 %v1557_v5  ;;  %v1553_v26 = vld [vmem:[%s2675_s1 + $0x8] sm:$0xff]  ;;  %v2375_v42 = vld [vmem:[%s1977_s24 + $0x30] sm:$0xff] }
 0x17a   : > { %v1856_v59 = vpop.eup %1855  ;;  %1863 = vpow2.f32 %v753_v33  ;;  %v824_v1 = vsub.f32 0.0, %v816_v35  ;;  %v856_v40 = vmul.f32 %v1497_v43, %v1497_v43  ;;  %v1443_v22 = vmul.f32 -1.442695, %v2316_v50 }
 0x17b   : > { %v1858_v48 = vpop.eup %1857  ;;  %1692 = vrot.lane.b32.xlu2 %v1691_v36, %s1930_s12  ;;  %1865 = vpow2.f32 %v755_v38  ;;  %v833_v52 = vmul.f32 1.442695, %v823_v37  ;;  %v863_v34 = vsub.f32 0.0, %v855_v41  ;;  %v1438_v7 = vmul.f32 -1.442695, %v2342_v6  ;;  %v1552_v41 = vld [vmem:[%s2675_s1] sm:$0xff] }
 0x17c   : > { %1867 = vpow2.f32 %v2068_v32  ;;  %v1701_v47 = vpack.i.bf16 %v1858_v48, %v1856_v59  ;;  %v835_v53 = vmul.f32 1.442695, %v824_v1  ;;  %v864_v44 = vsub.f32 0.0, %v856_v40  ;;  %1564 = vmatpush.bf16.msra.mxu2 %v1556_v12  ;;  %v2399_v1 = vld [vmem:[%s1977_s24 + $0x38] sm:$0xff] }
 0x17d   : > { %v1860_v45 = vpop.eup %1859  ;;  %1869 = vpow2.f32 %v833_v52  ;;  %v873_v49 = vmul.f32 1.442695, %v863_v34  ;;  %v1439_v9 = vmul.f32 -1.442695, %v2346_v8  ;;  %1310 = vmatpush.bf16.msra.mxu0 %v1556_v12  ;;  %v1444_v27 = vmul.f32 -1.442695, %v2375_v42 }
 0x17e   : > { %v1862_v55 = vpop.eup %1861  ;;  %1702 = vrot.lane.b32.xlu0 %v1701_v47, %s1926_s8  ;;  %1871 = vpow2.f32 %v835_v53  ;;  %v875_v57 = vmul.f32 1.442695, %v864_v44  ;;  %v1445_v40 = vmul.f32 -1.442695, %v2399_v1  ;;  %vm1166_vm6 = vcmask 392192  }
 0x17f   : > { %1873 = vpow2.f32 %v1443_v22  ;;  %v1711_v58 = vpack.i.bf16 %v1862_v55, %v1860_v45  ;;  %vm1175_vm9 = vcmask 523264  }
 0x180   : > { %v1864_v32 = vpop.eup %1863  ;;  %1875 = vpow2.f32 %v875_v57  ;;  %1565 = vmatpush.bf16.msra.mxu2 %v1555_v15 }
 0x181   : > { %v1866_v60 = vpop.eup %1865  ;;  %1712 = vrot.lane.b32.xlu1 %v1711_v58, %s1927_s9  ;;  %1877 = vpow2.f32 %v873_v49  ;;  %1311 = vmatpush.bf16.msra.mxu0 %v1555_v15  ;;  %v1912_v49 = vld [vmem:[%s1977_s24 + $0x20] sm:$0xff] }
 0x182   : > { %v1868_v61 = vpop.eup %1867  ;;  %v1706_v51 = vpack.i.bf16 %v1866_v60, %v1864_v32 }
 0x183   : > { %v1870_v62 = vpop.eup %1869  ;;  %v2327_v2 = vadd.f32 1.0, %v1868_v61 }
 0x184   : > { %v1872_v28 = vpop.eup %1871  ;;  %1707 = vrot.lane.b32.xlu2 %v1706_v51, %s1928_s10  ;;  %1566 = vmatpush.bf16.msra.mxu2 %v1554_v20 }
 0x185   : > { %v1874_v63 = vpop.eup %1873  ;;  %v1716_v0 = vpack.i.bf16 %v1872_v28, %v1870_v62  ;;  %1879 = vrcp.f32 %v2327_v2  ;;  %vm334_vm11 = vweird.f32 %v2327_v2  ;;  %1312 = vmatpush.bf16.msra.mxu0 %v1554_v20  ;;  %v338_v30 = vand.u32 2147483647, %v2327_v2 }
 0x186   : > { %v1876_v10 = vpop.eup %1875  ;;  %v2330_v39 = vadd.f32 1.0, %v1874_v63  ;;  %v340_v31 = vand.u32 2147483648, %v2327_v2 }
 0x187   : > { %1717 = vrot.lane.b32.xlu0 %v1716_v0, %s1929_s11  ;;  %v1878_v29 = vpop.eup %1877  ;;  %vm339_vm2 = vcmp.eq.f32.partialorder %v338_v30, 8.507059e+37  ;;  %s2653_s11 = scalar_lea.vmem %s2679_s5, %s1435_s21 }
 0x188   : > { %v1721_v46 = vpack.i.bf16 %v1876_v10, %v1878_v29  ;;  %1881 = vrcp.f32 %v2330_v39  ;;  %vm349_vm13 = vweird.f32 %v2330_v39  ;;  %v355_v33 = vand.u32 2147483648, %v2330_v39  ;;  %1567 = vmatpush.bf16.msra.mxu2 %v1553_v26 }
 0x189   : > { %1883 = vpow2.f32 %v1438_v7  ;;  %v353_v38 = vand.u32 2147483647, %v2330_v39  ;;  %1313 = vmatpush.bf16.msra.mxu0 %v1553_v26  ;;  %v341_v59 = vor.u32 1.1754944e-38, %v340_v31 }
 0x18a   : > { %1885 = vpow2.f32 %v1439_v9  ;;  %v356_v48 = vor.u32 1.1754944e-38, %v355_v33 }
 0x18b   : > { %v1880_v3 = vpop.eup %1879  ;;  %vm354_vm3 = vcmp.eq.f32.partialorder %v353_v38, 8.507059e+37 }
 0x18c   : > { %1722 = vrot.lane.b32.xlu2 %v1721_v46, %s1930_s12  ;;  %v330_v13 = vmul.f32 %v1880_v3, %v2327_v2  ;;  %vm335_vm12 = vweird.f32 %v1880_v3  ;;  %1568 = vmatpush.bf16.msra.mxu2 %v1552_v41  ;;  %v2426_v46 = vld [vmem:[%s1977_s24 + $0x10] sm:$0xff] }
 0x18d   : > { %vm2384_vm15 = vmor %vm334_vm11, %vm335_vm12  ;;  %1314 = vmatpush.bf16.msra.mxu0 %v1552_v41  ;;  %v1440_v4 = vmul.f32 -1.442695, %v2426_v46  ;;  %vm1184_vm11 = vcmask 654336  }
 0x18e   : > { %v2349_v11 = vpop.eup %1881  ;;  %v331_v16 = vsub.f32 1.0, %v330_v13 }
 0x18f   : > { %v345_v14 = vmul.f32 %v2349_v11, %v2330_v39  ;;  %v1884_v56 = vpop.eup %1883  ;;  %v2360_v17 = vpop.permute.xlu2 %1592  ;;  %vm350_vm14 = vweird.f32 %v2349_v11 }
 0x190   : > { %v1886_v19 = vpop.eup %1885  ;;  %v2365_v21 = vadd.f32 1.0, %v1884_v56  ;;  %v332_v23 = vmul.f32 %v1880_v3, %v331_v16  ;;  %vm2391_vm1 = vmor %vm349_vm13, %vm350_vm14  ;;  %v1594_v5 = vunpack.i.l.bf16 %v2360_v17  ;;  %vm1193_vm14 = vcmask 785408  }
 0x191   : > { %v346_v18 = vsub.f32 1.0, %v345_v14  ;;  %v2368_v25 = vadd.f32 1.0, %v1886_v19 }
 0x192   : > { %1887 = vrcp.f32 %v2365_v21  ;;  %v333_v35 = vadd.f32 %v1880_v3, %v332_v23  ;;  %vm274_vm5 = vweird.f32 %v2365_v21  ;;  %v278_v7 = vand.u32 2147483647, %v2365_v21 }
 0x193   : > { %v347_v24 = vmul.f32 %v2349_v11, %v346_v18  ;;  %1889 = vrcp.f32 %v2368_v25  ;;  %vm289_vm8 = vweird.f32 %v2368_v25  ;;  %v293_v18 = vand.u32 2147483647, %v2368_v25 }
 0x194   : > { %1891 = vpow2.f32 %v1444_v27  ;;  %v337_v22 = vsel %vm2384_vm15, %v1880_v3, %v333_v35  ;;  %v280_v3 = vand.u32 2147483648, %v2365_v21  ;;  %v295_v33 = vand.u32 2147483648, %v2368_v25 }
 0x195   : > { %v348_v36 = vadd.f32 %v2349_v11, %v347_v24  ;;  %v342_v44 = vsel %vm339_vm2, %v341_v59, %v337_v22  ;;  %1893 = vpow2.f32 %v1445_v40  ;;  %vm2477_vm15 = vcmp.eq.f32.partialorder %v278_v7, 8.507059e+37 }
 0x196   : > { %v393_v32 = vmul.f32 %v1912_v49, %v342_v44  ;;  %vm1202_vm2 = vcmask 916480   ;;  %v296_v44 = vor.u32 1.1754944e-38, %v295_v33 }
 0x197   : > { %v352_v52 = vsel %vm2391_vm1, %v2349_v11, %v348_v36  ;;  %vm2481_vm1 = vcmp.eq.f32.partialorder %v293_v18, 8.507059e+37 }
 0x198   : > { %v2409_v47 = vpop.eup %1887  ;;  %v357_v45 = vsel %vm354_vm3, %v356_v48, %v352_v52  ;;  %v281_v52 = vor.u32 1.1754944e-38, %v280_v3 }
 0x199   : > { %v2411_v53 = vpop.eup %1889  ;;  %v270_v57 = vmul.f32 %v2409_v47, %v2365_v21  ;;  %v394_v60 = vmul.f32 %v2316_v50, %v357_v45  ;;  %v1595_v50 = vunpack.i.h.bf16 %v2360_v17  ;;  %vm275_vm7 = vweird.f32 %v2409_v47  ;;  %v2486_v45 = vld [vmem:[%s1977_s24 + $0x18] sm:$0xff] }
 0x19a   : > { %v1892_v55 = vpop.eup %1891  ;;  %v285_v58 = vmul.f32 %v2411_v53, %v2368_v25  ;;  %vm290_vm10 = vweird.f32 %v2411_v53  ;;  %vm2459_vm12 = vmor %vm274_vm5, %vm275_vm7 }
 0x19b   : > { %v2419_v62 = vadd.f32 1.0, %v1892_v55  ;;  %v1894_v63 = vpop.eup %1893  ;;  %v271_v0 = vsub.f32 1.0, %v270_v57  ;;  %vm2469_vm13 = vmor %vm289_vm8, %vm290_vm10 }
 0x19c   : > { %v2407_v34 = vpop.permute.xlu2 %1602  ;;  %v286_v10 = vsub.f32 1.0, %v285_v58  ;;  %v2434_v9 = vadd.f32 1.0, %v1894_v63 }
 0x19d   : > { %1895 = vrcp.f32 %v2419_v62  ;;  %v272_v14 = vmul.f32 %v2409_v47, %v271_v0  ;;  %v1605_v24 = vunpack.i.h.bf16 %v2407_v34  ;;  %v1604_v26 = vunpack.i.l.bf16 %v2407_v34 }
 0x19e   : > { %v287_v15 = vmul.f32 %v2411_v53, %v286_v10  ;;  %1897 = vrcp.f32 %v2434_v9  ;;  %vm364_vm3 = vweird.f32 %v2419_v62  ;;  %vm379_vm7 = vweird.f32 %v2434_v9 }
 0x19f   : > { %v273_v30 = vadd.f32 %v2409_v47, %v272_v14  ;;  %1899 = vpow2.f32 %v1440_v4  ;;  %v385_v59 = vand.u32 2147483648, %v2434_v9 }
 0x1a0   : > { %v288_v31 = vadd.f32 %v2411_v53, %v287_v15 }
 0x1a1   : > { %v277_v58 = vsel %vm2459_vm12, %v2409_v47, %v273_v30 }
 0x1a2   : > { %v292_v49 = vsel %vm2469_vm13, %v2411_v53, %v288_v31  ;;  %v282_v47 = vsel %vm2477_vm15, %v281_v52, %v277_v58  ;;  %v386_v58 = vor.u32 1.1754944e-38, %v385_v59 }
 0x1a3   : > { %v2449_v27 = vpop.eup %1895  ;;  %v297_v53 = vsel %vm2481_vm1, %v296_v44, %v292_v49 }
 0x1a4   : > { %vm365_vm5 = vweird.f32 %v2449_v27 }
 0x1a5   : > { %vm2541_vm10 = vmor %vm364_vm3, %vm365_vm5 }
 0x1a6   : > { %v1588_v54 = vpop.permute.xlu1 %1587 }
 0x1a7   : > { %v1590_v61 = vunpack.i.h.bf16 %v1588_v54  ;;  %v1589_v51 = vunpack.i.l.bf16 %v1588_v54  ;;  %v1441_v54 = vmul.f32 -1.442695, %v2486_v45 }
 0x1a9   : > { %v2421_v2 = vpop.permute.xlu2 %1617  ;;  %v1154_v39 = vsel %vm397_vm0, %v394_v60, %v1590_v61  ;;  %v1153_v29 = vsel %vm397_vm0, %v393_v32, %v1589_v51  ;;  %v2497_v61 = vpop.eup %1897  ;;  %v360_v51 = vmul.f32 %v2449_v27, %v2419_v62  ;;  %1901 = vpow2.f32 %v1441_v54 }
 0x1aa   : > { %v1598_v28 = vpop.permute.xlu0 %1597  ;;  %v1163_v11 = vsel %vm1157_vm4, %v1154_v39, %v1595_v50  ;;  %v1162_v12 = vsel %vm1157_vm4, %v1153_v29, %v1594_v5  ;;  %v1900_v10 = vpop.eup %1899  ;;  %v375_v29 = vmul.f32 %v2497_v61, %v2434_v9  ;;  %v389_v50 = vmul.f32 %v2342_v6, %v282_v47 }
 0x1ab   : > { %v1600_v56 = vunpack.i.h.bf16 %v1598_v28  ;;  %v1599_v16 = vunpack.i.l.bf16 %v1598_v28  ;;  %v361_v4 = vsub.f32 1.0, %v360_v51  ;;  %v390_v5 = vmul.f32 %v2346_v8, %v297_v53 }
 0x1ac   : > { %v1620_v7 = vunpack.i.h.bf16 %v2421_v2  ;;  %v1619_v3 = vunpack.i.l.bf16 %v2421_v2  ;;  %v376_v14 = vsub.f32 1.0, %v375_v29  ;;  %v2515_v18 = vadd.f32 1.0, %v1900_v10 }
 0x1ad   : > { %v1171_v20 = vsel %vm1166_vm6, %v1162_v12, %v1599_v16  ;;  %v1172_v23 = vsel %vm1166_vm6, %v1163_v11, %v1600_v56  ;;  %v368_v16 = vand.u32 2147483647, %v2419_v62  ;;  %v362_v6 = vmul.f32 %v2449_v27, %v361_v4 }
 0x1ae   : > { %v1180_v37 = vsel %vm1175_vm9, %v1171_v20, %v1604_v26  ;;  %v1181_v41 = vsel %vm1175_vm9, %v1172_v23, %v1605_v24  ;;  %v370_v8 = vand.u32 2147483648, %v2419_v62  ;;  %v1149_v2 = vsel %vm397_vm0, %v389_v50, %v1619_v3 }
 0x1af   : > { %v1902_v56 = vpop.eup %1901  ;;  %v377_v30 = vmul.f32 %v2497_v61, %v376_v14  ;;  %vm380_vm8 = vweird.f32 %v2497_v61  ;;  %1903 = vrcp.f32 %v2515_v18  ;;  %vm2553_vm13 = vcmp.eq.f32.partialorder %v368_v16, 8.507059e+37 }
 0x1b0   : > { %v2524_v31 = vadd.f32 1.0, %v1902_v56  ;;  %vm2549_vm12 = vmor %vm379_vm7, %vm380_vm8  ;;  %v371_v62 = vor.u32 1.1754944e-38, %v370_v8  ;;  %vm304_vm1 = vweird.f32 %v2515_v18 }
 0x1b1   : > { %v378_v52 = vadd.f32 %v2497_v61, %v377_v30 }
 0x1b2   : > { %v1608_v13 = vpop.permute.xlu1 %1607  ;;  %v2473_v21 = vpop.permute.xlu2 %1632  ;;  %1905 = vrcp.f32 %v2524_v31  ;;  %vm319_vm5 = vweird.f32 %v2524_v31 }
 0x1b3   : > { %v1610_v19 = vunpack.i.h.bf16 %v1608_v13  ;;  %v1609_v17 = vunpack.i.l.bf16 %v1608_v13  ;;  %v1635_v33 = vunpack.i.h.bf16 %v2473_v21  ;;  %v382_v51 = vsel %vm2549_vm12, %v2497_v61, %v378_v52 }
 0x1b5   : > { %v1189_v40 = vsel %vm1184_vm11, %v1180_v37, %v1609_v17  ;;  %v1190_v48 = vsel %vm1184_vm11, %v1181_v41, %v1610_v19  ;;  %v1150_v19 = vsel %vm397_vm0, %v390_v5, %v1620_v7  ;;  %v383_v41 = vand.u32 2147483647, %v2434_v9 }
 0x1b7   : > { %v1613_v35 = vpop.permute.xlu0 %1612  ;;  %vm384_vm15 = vcmp.eq.f32.partialorder %v383_v41, 8.507059e+37 }
 0x1b8   : > { %v1615_v36 = vunpack.i.h.bf16 %v1613_v35  ;;  %v1614_v38 = vunpack.i.l.bf16 %v1613_v35  ;;  %v1634_v35 = vunpack.i.l.bf16 %v2473_v21 }
 0x1ba   : > { %v1623_v25 = vpop.permute.xlu1 %1622  ;;  %v1198_v32 = vsel %vm1193_vm14, %v1189_v40, %v1614_v38  ;;  %v1199_v60 = vsel %vm1193_vm14, %v1190_v48, %v1615_v36  ;;  %v1648_v11 = vpop.permute.xlu2 %1647  ;;  %v363_v48 = vadd.f32 %v2449_v27, %v362_v6 }
 0x1bb   : > { %v1625_v55 = vunpack.i.h.bf16 %v1623_v25  ;;  %v1624_v57 = vunpack.i.l.bf16 %v1623_v25  ;;  %v1650_v49 = vunpack.i.h.bf16 %v1648_v11  ;;  %v1649_v9 = vunpack.i.l.bf16 %v1648_v11 }
 0x1bd   : > { %v1207_v28 = vsel %vm1202_vm2, %v1198_v32, %v1624_v57  ;;  %v1208_v63 = vsel %vm1202_vm2, %v1199_v60, %v1625_v55  ;;  %v2559_v57 = vpop.eup %1903  ;;  %v367_v60 = vsel %vm2541_vm10, %v2449_v27, %v363_v48  ;;  %v387_v27 = vsel %vm384_vm15, %v386_v58, %v382_v51 }
 0x1be   : > { %v1215_v0 = vpack.c.bf16 %v1208_v63, %v1207_v28  ;;  %v2569_v47 = vpop.eup %1905  ;;  %v372_v29 = vsel %vm2553_vm13, %v371_v62, %v367_v60  ;;  %v300_v4 = vmul.f32 %v2559_v57, %v2515_v18  ;;  %v396_v3 = vmul.f32 %v2399_v1, %v387_v27 }
 0x1bf   : > { %v1628_v39 = vpop.permute.xlu0 %1627  ;;  %v315_v5 = vmul.f32 %v2569_v47, %v2524_v31  ;;  %v395_v7 = vmul.f32 %v2375_v42, %v372_v29  ;;  %v308_v42 = vand.u32 2147483647, %v2515_v18  ;;  %v310_v1 = vand.u32 2147483648, %v2515_v18 }
 0x1c0   : > { %1325 = vmatmul.bf16.vlgmr.msra.gmra.mxu2 %v1215_v0  ;;  %v1630_v12 = vunpack.i.h.bf16 %v1628_v39  ;;  %v1629_v13 = vunpack.i.l.bf16 %v1628_v39  ;;  %vm305_vm3 = vweird.f32 %v2559_v57  ;;  %vm320_vm7 = vweird.f32 %v2569_v47 }
 0x1c1   : > { %v316_v56 = vsub.f32 1.0, %v315_v5  ;;  %vm2599_vm8 = vmor %vm304_vm1, %vm305_vm3  ;;  %vm2607_vm10 = vcmp.eq.f32.partialorder %v308_v42, 8.507059e+37  ;;  %v311_v34 = vor.u32 1.1754944e-38, %v310_v1 }
 0x1c2   : > { %v1158_v17 = vsel %vm1157_vm4, %v1149_v2, %v1629_v13  ;;  %v1159_v20 = vsel %vm1157_vm4, %v1150_v19, %v1630_v12  ;;  %v1663_v25 = vpop.permute.xlu2 %1662  ;;  %v301_v13 = vsub.f32 1.0, %v300_v4  ;;  %vm2611_vm12 = vmor %vm319_vm5, %vm320_vm7 }
 0x1c3   : > { %v1168_v38 = vsel %vm1166_vm6, %v1159_v20, %v1635_v33  ;;  %v1167_v37 = vsel %vm1166_vm6, %v1158_v17, %v1634_v35  ;;  %v1665_v17 = vunpack.i.h.bf16 %v1663_v25  ;;  %v1664_v20 = vunpack.i.l.bf16 %v1663_v25 }
 0x1c4   : > { %v1638_v15 = vpop.permute.xlu1 %1637  ;;  %v302_v2 = vmul.f32 %v2559_v57, %v301_v13 }
 0x1c5   : > { %v1640_v24 = vunpack.i.h.bf16 %v1638_v15  ;;  %v1639_v26 = vunpack.i.l.bf16 %v1638_v15 }
 0x1c7   : > { %v1643_v23 = vpop.permute.xlu0 %1642  ;;  %v1177_v21 = vsel %vm1175_vm9, %v1168_v38, %v1640_v24  ;;  %v1176_v40 = vsel %vm1175_vm9, %v1167_v37, %v1639_v26  ;;  %v303_v38 = vadd.f32 %v2559_v57, %v302_v2  ;;  %v325_v37 = vand.u32 2147483648, %v2524_v31 }
 0x1c8   : > { %v1645_v43 = vunpack.i.h.bf16 %v1643_v23  ;;  %v1644_v36 = vunpack.i.l.bf16 %v1643_v23  ;;  %v317_v23 = vmul.f32 %v2569_v47, %v316_v56 }
 0x1ca   : > { %v1185_v54 = vsel %vm1184_vm11, %v1176_v40, %v1644_v36  ;;  %v1186_v55 = vsel %vm1184_vm11, %v1177_v21, %v1645_v43  ;;  %v318_v59 = vadd.f32 %v2569_v47, %v317_v23  ;;  %v323_v21 = vand.u32 2147483647, %v2524_v31 }
 0x1cb   : > { %v1194_v0 = vsel %vm1193_vm14, %v1185_v54, %v1649_v9  ;;  %v1195_v10 = vsel %vm1193_vm14, %v1186_v55, %v1650_v49  ;;  %v307_v31 = vsel %vm2599_vm8, %v2559_v57, %v303_v38  ;;  %v326_v54 = vor.u32 1.1754944e-38, %v325_v37 }
 0x1cc   : > { %v322_v51 = vsel %vm2611_vm12, %v2569_v47, %v318_v59  ;;  %vm324_vm13 = vcmp.eq.f32.partialorder %v323_v21, 8.507059e+37  ;;  %v1350_v21 = vpop.f32.mrf.mxu3 }
 0x1cd   : > { %v1678_v14 = vpop.permute.xlu2 %1677 }
 0x1ce   : > { %v1680_v25 = vunpack.i.h.bf16 %v1678_v14  ;;  %v1679_v44 = vunpack.i.l.bf16 %v1678_v14 }
 0x1cf   : > { %v1653_v32 = vpop.permute.xlu1 %1652 }
 0x1d0   : > { %v1655_v28 = vunpack.i.h.bf16 %v1653_v32  ;;  %v1654_v63 = vunpack.i.l.bf16 %v1653_v32 }
 0x1d2   : > { %v1203_v53 = vsel %vm1202_vm2, %v1194_v0, %v1654_v63  ;;  %v1204_v39 = vsel %vm1202_vm2, %v1195_v10, %v1655_v28 }
 0x1d3   : > { %v1211_v61 = vpack.c.bf16 %v1204_v39, %v1203_v53  ;;  %v312_v53 = vsel %vm2607_vm10, %v311_v34, %v307_v31  ;;  %v327_v39 = vsel %vm324_vm13, %v326_v54, %v322_v51  ;;  %v1345_v54 = vpop.f32.mrf.mxu1 }
 0x1d4   : > { %v1658_v50 = vpop.permute.xlu0 %1657  ;;  %v391_v4 = vmul.f32 %v2426_v46, %v312_v53  ;;  %v392_v47 = vmul.f32 %v2486_v45, %v327_v39 }
 0x1d5   : > { %1315 = vmatmul.bf16.vlgmr.msra.gmra.mxu0 %v1211_v61  ;;  %v1660_v11 = vunpack.i.h.bf16 %v1658_v50  ;;  %v1659_v12 = vunpack.i.l.bf16 %v1658_v50  ;;  %v1693_v40 = vpop.permute.xlu2 %1692 }
 0x1d6   : > { %v1695_v49 = vunpack.i.h.bf16 %v1693_v40  ;;  %v1694_v9 = vunpack.i.l.bf16 %v1693_v40  ;;  %v1352_v40 = vpop.f32.mrf.mxu3 }
 0x1d7   : > { %v1668_v15 = vpop.permute.xlu1 %1667  ;;  %v1156_v16 = vsel %vm397_vm0, %v396_v3, %v1660_v11  ;;  %v1155_v6 = vsel %vm397_vm0, %v395_v7, %v1659_v12 }
 0x1d8   : > { %v1670_v8 = vunpack.i.h.bf16 %v1668_v15  ;;  %v1669_v19 = vunpack.i.l.bf16 %v1668_v15  ;;  %v1164_v26 = vsel %vm1157_vm4, %v1155_v6, %v1664_v20  ;;  %v1165_v30 = vsel %vm1157_vm4, %v1156_v16, %v1665_v17 }
 0x1da   : > { %v1174_v43 = vsel %vm1166_vm6, %v1165_v30, %v1670_v8  ;;  %v1173_v36 = vsel %vm1166_vm6, %v1164_v26, %v1669_v19 }
 0x1dd   : > { %v1673_v24 = vpop.permute.xlu0 %1672 }
 0x1de   : > { %v1675_v33 = vunpack.i.h.bf16 %v1673_v24  ;;  %v1674_v35 = vunpack.i.l.bf16 %v1673_v24  ;;  %v1708_v3 = vpop.permute.xlu2 %1707 }
 0x1df   : > { %v1710_v6 = vunpack.i.h.bf16 %v1708_v3  ;;  %v1709_v46 = vunpack.i.l.bf16 %v1708_v3 }
 0x1e0   : > { %v1183_v48 = vsel %vm1175_vm9, %v1174_v43, %v1675_v33  ;;  %v1182_v22 = vsel %vm1175_vm9, %v1173_v36, %v1674_v35 }
 0x1e1   : > { %v1191_v32 = vsel %vm1184_vm11, %v1182_v22, %v1679_v44  ;;  %v1192_v60 = vsel %vm1184_vm11, %v1183_v48, %v1680_v25  ;;  %v1728_v48 = vld [vmem:[%s2676_s2] ss:$0 sm:$0xff]  ;;  %v1355_v22 = vpop.f32.mrf.mxu3 }
 0x1e2   : > { %v1683_v62 = vpop.permute.xlu1 %1682 }
 0x1e3   : > { %v1685_v55 = vunpack.i.h.bf16 %v1683_v62  ;;  %v1684_v58 = vunpack.i.l.bf16 %v1683_v62 }
 0x1e5   : > { %v1200_v28 = vsel %vm1193_vm14, %v1191_v32, %v1684_v58  ;;  %v1201_v63 = vsel %vm1193_vm14, %v1192_v60, %v1685_v55  ;;  %v1347_v60 = vpop.f32.mrf.mxu1 }
 0x1e6   : > { %v1209_v57 = vsel %vm1202_vm2, %v1200_v28, %v1694_v9  ;;  %v1210_v0 = vsel %vm1202_vm2, %v1201_v63, %v1695_v49  ;;  %v1723_v24 = vpop.permute.xlu2 %1722 }
 0x1e7   : > { %v1217_v10 = vpack.c.bf16 %v1210_v0, %v1209_v57  ;;  %v1725_v35 = vunpack.i.h.bf16 %v1723_v24  ;;  %v1724_v43 = vunpack.i.l.bf16 %v1723_v24 }
 0x1e8   : > { %v1688_v29 = vpop.permute.xlu0 %1687 }
 0x1e9   : > { %1330 = vmatmul.bf16.gmra.mxu2 %v1217_v10  ;;  %v1690_v61 = vunpack.i.h.bf16 %v1688_v29  ;;  %v1689_v50 = vunpack.i.l.bf16 %v1688_v29  ;;  %v1357_v62 = vpop.f32.mrf.mxu3 }
 0x1ea   : > { %v1698_v27 = vpop.permute.xlu1 %1697 }
 0x1eb   : > { %v1700_v5 = vunpack.i.h.bf16 %v1698_v27  ;;  %v1699_v7 = vunpack.i.l.bf16 %v1698_v27  ;;  %v1152_v11 = vsel %vm397_vm0, %v392_v47, %v1690_v61  ;;  %v1151_v12 = vsel %vm397_vm0, %v391_v4, %v1689_v50 }
 0x1ed   : > { %v1161_v14 = vsel %vm1157_vm4, %v1152_v11, %v1700_v5  ;;  %v1160_v15 = vsel %vm1157_vm4, %v1151_v12, %v1699_v7 }
 0x1f0   : > { %v1703_v13 = vpop.permute.xlu0 %1702 }
 0x1f1   : > { %v1705_v56 = vunpack.i.h.bf16 %v1703_v13  ;;  %v1704_v16 = vunpack.i.l.bf16 %v1703_v13  ;;  %v1360_v28 = vpop.f32.mrf.mxu3 }
 0x1f3   : > { %v1170_v45 = vsel %vm1166_vm6, %v1161_v14, %v1705_v56  ;;  %v1169_v8 = vsel %vm1166_vm6, %v1160_v15, %v1704_v16  ;;  %v1713_v19 = vpop.permute.xlu1 %1712 }
 0x1f4   : > { %v1715_v2 = vunpack.i.h.bf16 %v1713_v19  ;;  %v1714_v17 = vunpack.i.l.bf16 %v1713_v19  ;;  %v1178_v20 = vsel %vm1175_vm9, %v1169_v8, %v1709_v46  ;;  %v1179_v42 = vsel %vm1175_vm9, %v1170_v45, %v1710_v6 }
 0x1f6   : > { %v1187_v1 = vsel %vm1184_vm11, %v1178_v20, %v1714_v17  ;;  %v1188_v23 = vsel %vm1184_vm11, %v1179_v42, %v1715_v2 }
 0x1f9   : > { %v1718_v26 = vpop.permute.xlu0 %1717  ;;  %v1362_v39 = vpop.f32.mrf.mxu3 }
 0x1fa   : > { %v1720_v30 = vunpack.i.h.bf16 %v1718_v26  ;;  %v1719_v33 = vunpack.i.l.bf16 %v1718_v26 }
 0x1fc   : > { %v1196_v36 = vsel %vm1193_vm14, %v1187_v1, %v1719_v33  ;;  %v1197_v38 = vsel %vm1193_vm14, %v1188_v23, %v1720_v30 }
 0x1fd   : > { %v1205_v37 = vsel %vm1202_vm2, %v1196_v36, %v1724_v43  ;;  %v1206_v41 = vsel %vm1202_vm2, %v1197_v38, %v1725_v35 }
 0x1fe   : > { %v1213_v59 = vpack.c.bf16 %v1206_v41, %v1205_v37 }
 0x200   : > { %1320 = vmatmul.bf16.gmra.mxu0 %v1213_v59 }
 0x243   : > { %v1326_v52 = vpop.f32.mrf.mxu2 }
 0x244   : > { %v1327_v34 = vadd.f32 %v1728_v48, %v1326_v52 }
 0x246   : > { %v1356_v18 = vadd.f32 %v1355_v22, %v1327_v34 }
 0x248   : > { %1369 = vst.msk [vmem:[%s2653_s11 + $0x20] sm:$0xff] %vm1157_vm4, %v1356_v18 }
 0x24b   : > { %v1328_v25 = vpop.f32.mrf.mxu2 }
 0x24c   : > { %v1329_v44 = vadd.f32 %v1728_v48, %v1328_v25 }
 0x24e   : > { %v1358_v31 = vadd.f32 %v1357_v62, %v1329_v44 }
 0x250   : > { %1370 = vst.msk [vmem:[%s2653_s11 + $0x28] sm:$0xff] %vm1157_vm4, %v1358_v31 }
 0x252   : > { %v1316_v55 = vpop.f32.mrf.mxu0 }
 0x253   : > { %v1317_v58 = vadd.f32 %v1728_v48, %v1316_v55 }
 0x255   : > { %v1346_v49 = vadd.f32 %v1345_v54, %v1317_v58 }
 0x257   : > { %1365 = vst.msk [vmem:[%s2653_s11] sm:$0xff] %vm1157_vm4, %v1346_v49 }
 0x25a   : > { %v1318_v9 = vpop.f32.mrf.mxu0 }
 0x25b   : > { %v1319_v32 = vadd.f32 %v1728_v48, %v1318_v9 }
 0x25d   : > { %v1348_v51 = vadd.f32 %v1347_v60, %v1319_v32 }
 0x25f   : > { %1366 = vst.msk [vmem:[%s2653_s11 + $0x8] sm:$0xff] %vm1157_vm4, %v1348_v51 }
 0x26c   : > { %v1331_v63 = vpop.f32.mrf.mxu2 }
 0x26d   : > { %v1332_v57 = vadd.f32 %v1728_v48, %v1331_v63 }
 0x26f   : > { %v1361_v0 = vadd.f32 %v1360_v28, %v1332_v57 }
 0x271   : > { %1371 = vst.msk [vmem:[%s2653_s11 + $0x30] sm:$0xff] %vm1157_vm4, %v1361_v0 }
 0x274   : > { %v1333_v10 = vpop.f32.mrf.mxu2 }
 0x275   : > { %v1334_v53 = vadd.f32 %v1728_v48, %v1333_v10 }
 0x277   : > { %v1363_v29 = vadd.f32 %v1362_v39, %v1334_v53 }
 0x279   : > { %1372 = vst.msk [vmem:[%s2653_s11 + $0x38] sm:$0xff] %vm1157_vm4, %v1363_v29 }
 0x27d   : > { %v1321_v27 = vpop.f32.mrf.mxu0 }
 0x27e   : > { %v1322_v4 = vadd.f32 %v1728_v48, %v1321_v27 }
 0x280   : > { %v1351_v47 = vadd.f32 %v1350_v21, %v1322_v4 }
 0x282   : > { %1367 = vst.msk [vmem:[%s2653_s11 + $0x10] sm:$0xff] %vm1157_vm4, %v1351_v47 }
 0x285   : > { %v1323_v61 = vpop.f32.mrf.mxu0 }
 0x286   : > { %v1324_v50 = vadd.f32 %v1728_v48, %v1323_v61 }
 0x288   : > { %v1353_v5 = vadd.f32 %v1352_v40, %v1324_v50 }
 0x28a   : > { %1368 = vst.msk [vmem:[%s2653_s11 + $0x18] sm:$0xff] %vm1157_vm4, %v1353_v5 }
 0x28b PF: > { %s15_s18 = sadd.s32 1, %s1921_s18  }
 0x28c   : > { %p12_p4 = scmp.ge.s32.totalorder %s15_s18, 4  }
 0x28e   :  { %14 = sbr.rel (!%p12_p4) target bundleno = 1 (0x1), region = 70 }

</bundles_post_ra>
